<compile_context>
chip_gen: v7x
topology: tpu7x:2x2x1
jax: 0.10.0
libtpu: 0.0.40
codegen_flags: <defaults>
</compile_context>

<pallas_src>
import functools
import math

import jax
import jax.numpy as jnp
from jax import lax
from jax.experimental import pallas as pl
from jax.experimental.pallas import tpu as pltpu


def _round_up(x, m):
    return ((x + m - 1) // m) * m


# ---------------------------------------------------------------------------
# Fused linear kernel: y = act(x @ W^T + b) [+ residual] [-> LayerNorm]
# ---------------------------------------------------------------------------
def _make_fused_linear_kernel(*, activation, has_residual, has_ln, eps,
                              compute_dtype, use_acc):
    def epilogue(y, b_ref, res_ref, g_ref, bb_ref, o_ref):
        y = y + b_ref[...].astype(jnp.float32)
        if activation == "gelu":                      # fast_gelu: x * sigmoid(1.702 x)
            y = y * jax.nn.sigmoid(1.702 * y)
        elif activation == "relu":
            y = jnp.maximum(y, 0.0)
        elif activation == "swish":
            y = y * jax.nn.sigmoid(y)
        if has_residual:
            y = y + res_ref[...].astype(jnp.float32)
        if has_ln:
            # one-pass stats: halves the XLU reductions in the serial epilogue
            inv_n = 1.0 / y.shape[-1]
            s1 = jnp.sum(y, axis=-1, keepdims=True)
            s2 = jnp.sum(y * y, axis=-1, keepdims=True)
            mean = s1 * inv_n
            var = jnp.maximum(s2 * inv_n - mean * mean, 0.0)
            y = (y - mean) * lax.rsqrt(var + eps)
            y = y * g_ref[...].astype(jnp.float32) + bb_ref[...].astype(jnp.float32)
        o_ref[...] = y.astype(o_ref.dtype)

    def kernel(*refs):
        it = iter(refs)
        x_ref = next(it)                      # (tm, tk)
        w_ref = next(it)                      # (tn, tk)  PyTorch (out, in) layout
        b_ref = next(it)                      # (1, tn)
        res_ref = next(it) if has_residual else None
        g_ref = next(it) if has_ln else None
        bb_ref = next(it) if has_ln else None
        o_ref = next(it)                      # (tm, tn)
        acc_ref = next(it) if use_acc else None   # (tm, tn) f32 scratch

        x = x_ref[...]
        w = w_ref[...]
        if compute_dtype is not None:
            if x.dtype != compute_dtype:
                x = x.astype(compute_dtype)
            if w.dtype != compute_dtype:
                w = w.astype(compute_dtype)
        # Contract last axis of both operands -> no external weight transpose needed.
        part = lax.dot_general(x, w, dimension_numbers=(((1,), (1,)), ((), ())),
                               preferred_element_type=jnp.float32)

        if use_acc:
            k_idx = pl.program_id(2)
            nk = pl.num_programs(2)

            @pl.when(k_idx == 0)
            def _():
                acc_ref[...] = part

            @pl.when(k_idx > 0)
            def _():
                acc_ref[...] += part

            @pl.when(k_idx == nk - 1)
            def _():
                epilogue(acc_ref[...], b_ref, res_ref, g_ref, bb_ref, o_ref)
        else:
            # Resident-weight path: no accumulator round-trip through VMEM.
            epilogue(part, b_ref, res_ref, g_ref, bb_ref, o_ref)

    return kernel


def fused_linear(x2d, weight, bias, *, residual=None, activation=None,
                 ln_scale=None, ln_bias=None, ln_eps=1e-5,
                 tm=256, compute_dtype=None):
    """x2d: (M, K); weight: (N, K) PyTorch layout; bias: (N,). Returns (M, N)."""
    M, K = x2d.shape
    N, Kw = weight.shape
    assert Kw == K
    has_res = residual is not None
    has_ln = ln_scale is not None
    if has_ln:
        assert ln_bias is not None
    cd = None if compute_dtype is None else jnp.dtype(compute_dtype)

    # Row tile: large (MXU-friendly), clamped so tiny inputs don't over-pad.
    tm = max(8, min(tm, _round_up(M, 8)))
    Mp = _round_up(M, tm)

    wbytes = weight.dtype.itemsize
    xbytes = x2d.dtype.itemsize

    # K tile: keep the weight fully resident when small, otherwise tile K
    # (f32 accumulator) so the working set stays bounded on v7x's 64 MiB VMEM.
    tk = K
    if N * K * wbytes > 12 * 1024 * 1024:
        for cand in (512, 256, 128):
            if K % cand == 0:
                tk = cand
                break
    nk = K // tk
    use_acc = nk > 1

    # N tile: LayerNorm needs the whole row; otherwise tile very wide outputs.
    tn = N
    if not has_ln and N > 4096:
        for cand in (2048, 1024, 512, 256, 128):
            if N % cand == 0:
                tn = cand
                break
    nj = N // tn

    x_p = x2d if Mp == M else jnp.pad(x2d, ((0, Mp - M), (0, 0)))
    inputs = [x_p, weight, bias.reshape(1, N)]
    in_specs = [
        pl.BlockSpec((tm, tk), lambda i, j, k: (i, k)),
        pl.BlockSpec((tn, tk), lambda i, j, k: (j, k)),
        pl.BlockSpec((1, tn), lambda i, j, k: (0, j)),
    ]
    if has_res:
        r_p = residual if Mp == M else jnp.pad(residual, ((0, Mp - M), (0, 0)))
        inputs.append(r_p)
        in_specs.append(pl.BlockSpec((tm, tn), lambda i, j, k: (i, j)))
    if has_ln:
        inputs.append(ln_scale.reshape(1, N))
        inputs.append(ln_bias.reshape(1, N))
        in_specs.append(pl.BlockSpec((1, tn), lambda i, j, k: (0, j)))
        in_specs.append(pl.BlockSpec((1, tn), lambda i, j, k: (0, j)))

    kernel = _make_fused_linear_kernel(
        activation=activation, has_residual=has_res, has_ln=has_ln,
        eps=ln_eps, compute_dtype=cd, use_acc=use_acc)

    scratch = [pltpu.VMEM((tm, tn), jnp.float32)] if use_acc else []

    # Explicit VMEM budget: double-buffered inputs/outputs + accumulator + margin.
    need = 2 * (tm * tk * xbytes + tn * tk * wbytes + tn * 4 + tm * tn * xbytes)
    if has_res:
        need += 2 * tm * tn * xbytes
    if has_ln:
        need += 4 * tn * 4
    if use_acc:
        need += tm * tn * 4
    vmem_limit = int(min(max(2 * need, 32 * 1024 * 1024), 56 * 1024 * 1024))

    bytes_accessed = (Mp * K + N * K * max(1, Mp // tm) + Mp * N) * xbytes
    if has_res:
        bytes_accessed += Mp * N * xbytes
    cost = pl.CostEstimate(
        flops=2 * Mp * K * N,
        transcendentals=Mp * N if activation in ("gelu", "swish") else 0,
        bytes_accessed=int(bytes_accessed))

    out = pl.pallas_call(
        kernel,
        out_shape=jax.ShapeDtypeStruct((Mp, N), x2d.dtype),
        grid_spec=pltpu.PrefetchScalarGridSpec(
            num_scalar_prefetch=0,
            grid=(Mp // tm, nj, nk),
            in_specs=in_specs,
            out_specs=pl.BlockSpec((tm, tn), lambda i, j, k: (i, j)),
            scratch_shapes=scratch,
        ),
        compiler_params=pltpu.CompilerParams(
            dimension_semantics=("parallel", "parallel", "arbitrary"),
            vmem_limit_bytes=vmem_limit),
        cost_estimate=cost,
    )(*inputs)
    return out[:M] if Mp != M else out


def _linear3d(x, weight, bias, *, residual=None, **kw):
    B, S, _ = x.shape
    N = weight.shape[0]
    r2d = None if residual is None else residual.reshape(B * S, N)
    y = fused_linear(x.reshape(B * S, x.shape[-1]), weight, bias, residual=r2d, **kw)
    return y.reshape(B, S, N)


# ---------------------------------------------------------------------------
# Self-attention kernel: one batch element per grid step, heads read directly
# from the fused (B, S, 3H) QKV activation, ctx written in (B, S, H) layout.
# ---------------------------------------------------------------------------
def _attention_kernel(qkv_ref, m_ref, o_ref, *, num_heads, head_dim, scale,
                      compute_dtype):
    H = num_heads * head_dim
    m = m_ref[0].astype(jnp.float32)                      # (1, S) additive mask
    for h in range(num_heads):
        lo = h * head_dim
        # Pre-scale q: S*dh multiplies instead of scaling the (S, S) score matrix.
        q = qkv_ref[0, :, lo:lo + head_dim].astype(jnp.float32) * scale
        k = qkv_ref[0, :, H + lo:H + lo + head_dim]
        v = qkv_ref[0, :, 2 * H + lo:2 * H + lo + head_dim]
        if compute_dtype is not None:
            q = q.astype(compute_dtype)
            k = k.astype(compute_dtype)
        s = lax.dot_general(q, k, dimension_numbers=(((1,), (1,)), ((), ())),
                            preferred_element_type=jnp.float32)
        s = s + m
        s = s - jnp.max(s, axis=-1, keepdims=True)
        p = jnp.exp(s)
        denom = jnp.sum(p, axis=-1, keepdims=True)
        inv = pl.reciprocal(denom, approx=compute_dtype is not None)
        p = p * inv
        mm_dtype = compute_dtype if compute_dtype is not None else v.dtype
        ctx = jnp.dot(p.astype(mm_dtype), v.astype(mm_dtype),
                      preferred_element_type=jnp.float32)
        o_ref[0, :, lo:lo + head_dim] = ctx.astype(o_ref.dtype)


def attention(qkv, attn_mask, *, num_heads, compute_dtype=None):
    """qkv: (B, S, 3H) fused QKV activation; attn_mask: (B, 1, 1, S) additive.
    Returns context already merged into (B, S, H)."""
    B, S, threeH = qkv.shape
    H = threeH // 3
    assert H % num_heads == 0
    dh = H // num_heads
    scale = 1.0 / math.sqrt(dh)
    cd = None if compute_dtype is None else jnp.dtype(compute_dtype)
    mask = attn_mask.reshape(B, 1, S).astype(jnp.float32)

    kern = functools.partial(_attention_kernel, num_heads=num_heads,
                             head_dim=dh, scale=scale, compute_dtype=cd)

    xbytes = qkv.dtype.itemsize
    need = 2 * (S * threeH * xbytes + S * 4 + S * H * xbytes) + 2 * S * S * 4
    vmem_limit = int(min(max(2 * need, 32 * 1024 * 1024), 56 * 1024 * 1024))
    cost = pl.CostEstimate(
        flops=4 * B * num_heads * S * S * dh,
        transcendentals=B * num_heads * S * S,
        bytes_accessed=int(B * S * (threeH + H) * xbytes + B * S * 4))

    return pl.pallas_call(
        kern,
        out_shape=jax.ShapeDtypeStruct((B, S, H), qkv.dtype),
        grid_spec=pltpu.PrefetchScalarGridSpec(
            num_scalar_prefetch=0,
            grid=(B,),
            in_specs=[
                pl.BlockSpec((1, S, threeH), lambda b: (b, 0, 0)),
                pl.BlockSpec((1, 1, S), lambda b: (b, 0, 0)),
            ],
            out_specs=pl.BlockSpec((1, S, H), lambda b: (b, 0, 0)),
        ),
        compiler_params=pltpu.CompilerParams(
            dimension_semantics=("parallel",),
            vmem_limit_bytes=vmem_limit),
        cost_estimate=cost,
    )(qkv, mask)


# ---------------------------------------------------------------------------
# AlbertLayer / AlbertEncoder forward
# ---------------------------------------------------------------------------
def _albert_layer(h, attn_mask, p, num_heads, *, hidden_act, tm, compute_dtype):
    # Q/K/V projections fused into one matmul (weights stacked as (3H, H)).
    qkv = _linear3d(h, p["qkv_w"], p["qkv_b"], tm=tm, compute_dtype=compute_dtype)
    ctx = attention(qkv, attn_mask, num_heads=num_heads, compute_dtype=compute_dtype)

    # BertSelfOutput (+ dropout identity) + AlbertLayer.LayerNorm, fused.
    attn_out = _linear3d(ctx, p["attn_out_w"], p["attn_out_b"], residual=h,
                         ln_scale=p["ln1_g"], ln_bias=p["ln1_b"], ln_eps=1e-5,
                         tm=tm, compute_dtype=compute_dtype)

    # BertIntermediate (dense + fast_gelu), fused.
    inter = _linear3d(attn_out, p["ffn_inter_w"], p["ffn_inter_b"],
                      activation=hidden_act, tm=tm, compute_dtype=compute_dtype)

    # BertOutput (+ dropout identity) + AlbertLayer.LayerNorm_1, fused.
    out = _linear3d(inter, p["ffn_out_w"], p["ffn_out_b"], residual=attn_out,
                    ln_scale=p["ln2_g"], ln_bias=p["ln2_b"], ln_eps=1e-5,
                    tm=tm, compute_dtype=compute_dtype)
    return out


@functools.partial(jax.jit, static_argnames=(
    "num_hidden_layers", "num_attention_heads", "output_all_encoded_layers",
    "hidden_act", "tm", "compute_dtype"))
def albert_encoder_forward(hidden_states, attention_mask, params, *,
                           num_hidden_layers, num_attention_heads,
                           output_all_encoded_layers=True, hidden_act="gelu",
                           tm=256, compute_dtype="bfloat16"):
    """hidden_states: (B, S, E); attention_mask: (B, 1, 1, S) additive."""
    cd = None if compute_dtype is None else jnp.dtype(compute_dtype)
    p = dict(params)
    if cd is not None:
        # Cast the matmul weights once per forward (ALBERT reuses one layer's weights):
        # halves weight DMA and uses the native bf16 MXU path; f32 accumulation in-kernel.
        for name in ("emb_w", "qkv_w", "attn_out_w", "ffn_inter_w", "ffn_out_w"):
            p[name] = p[name].astype(cd)

    h = _linear3d(hidden_states, p["emb_w"], p["emb_b"], tm=tm, compute_dtype=cd)
    all_layers = []
    for _ in range(num_hidden_layers):   # ALBERT: same layer weights reused
        h = _albert_layer(h, attention_mask, p, num_attention_heads,
                          hidden_act=hidden_act, tm=tm, compute_dtype=cd)
        if output_all_encoded_layers:
            all_layers.append(h)
    if not output_all_encoded_layers:
        all_layers.append(h)
    return all_layers


# ---------------------------------------------------------------------------
# Pure-JAX reference (mirrors the PyTorch module, eval mode, eps=1e-5)
# ---------------------------------------------------------------------------
_HI = lax.Precision.HIGHEST


def _ref_linear(x, w, b):
    return jnp.einsum("...k,nk->...n", x, w, precision=_HI) + b


def _ref_ln(x, g, b, eps=1e-5):
    mean = jnp.mean(x, axis=-1, keepdims=True)
    var = jnp.mean((x - mean) ** 2, axis=-1, keepdims=True)
    return (x - mean) / jnp.sqrt(var + eps) * g + b


def _ref_fast_gelu(x):
    return x * jax.nn.sigmoid(1.702 * x)


def _ref_attention(h, mask, p, num_heads):
    B, S, H = h.shape
    dh = H // num_heads
    qkv = _ref_linear(h, p["qkv_w"], p["qkv_b"])
    q, k, v = jnp.split(qkv, 3, axis=-1)

    def heads(t):
        return t.reshape(B, S, num_heads, dh).transpose(0, 2, 1, 3)

    q, k, v = heads(q), heads(k), heads(v)
    s = jnp.einsum("bhqd,bhkd->bhqk", q, k, precision=_HI) / math.sqrt(dh)
    s = s + mask
    pr = jax.nn.softmax(s, axis=-1)
    ctx = jnp.einsum("bhqk,bhkd->bhqd", pr, v, precision=_HI)
    return ctx.transpose(0, 2, 1, 3).reshape(B, S, H)


def _ref_layer(h, mask, p, num_heads):
    ctx = _ref_attention(h, mask, p, num_heads)
    attn = _ref_ln(_ref_linear(ctx, p["attn_out_w"], p["attn_out_b"]) + h,
                   p["ln1_g"], p["ln1_b"])
    inter = _ref_fast_gelu(_ref_linear(attn, p["ffn_inter_w"], p["ffn_inter_b"]))
    out = _ref_ln(_ref_linear(inter, p["ffn_out_w"], p["ffn_out_b"]) + attn,
                  p["ln2_g"], p["ln2_b"])
    return out


def _reference_encoder(x, mask, p, num_layers, num_heads, output_all=True):
    h = _ref_linear(x, p["emb_w"], p["emb_b"])
    outs = []
    for _ in range(num_layers):
        h = _ref_layer(h, mask, p, num_heads)
        if output_all:
            outs.append(h)
    if not output_all:
        outs.append(h)
    return outs


# ---------------------------------------------------------------------------
if __name__ == "__main__":
    B, S, E, H, I, NH, L = 2, 8, 16, 32, 64, 4, 2   # batch, seq, emb, hidden, intermediate, heads, layers
    key = jax.random.PRNGKey(0)
    keys = jax.random.split(key, 16)

    def w(k, shape, scale=0.05):
        return jax.random.normal(k, shape, dtype=jnp.float32) * scale

    params = {
        "emb_w": w(keys[0], (H, E)), "emb_b": w(keys[1], (H,)),
        "qkv_w": w(keys[2], (3 * H, H)), "qkv_b": w(keys[3], (3 * H,)),
        "attn_out_w": w(keys[4], (H, H)), "attn_out_b": w(keys[5], (H,)),
        "ln1_g": 1.0 + w(keys[6], (H,), 0.1), "ln1_b": w(keys[7], (H,), 0.1),
        "ffn_inter_w": w(keys[8], (I, H)), "ffn_inter_b": w(keys[9], (I,)),
        "ffn_out_w": w(keys[10], (H, I)), "ffn_out_b": w(keys[11], (H,)),
        "ln2_g": 1.0 + w(keys[12], (H,), 0.1), "ln2_b": w(keys[13], (H,), 0.1),
    }

    x = jax.random.normal(keys[14], (B, S, E), dtype=jnp.float32)
    # Additive attention mask (B, 1, 1, S): second example has 3 padded key positions.
    lens = jnp.array([S, S - 3])
    key_mask = (jnp.arange(S)[None, :] < lens[:, None]).astype(jnp.float32)
    attn_mask = (1.0 - key_mask)[:, None, None, :] * -10000.0

    # Fast path: bf16 MXU inputs, f32 accumulation (default).
    outs_bf16 = albert_encoder_forward(
        x, attn_mask, params,
        num_hidden_layers=L, num_attention_heads=NH,
        output_all_encoded_layers=True)
    outs_bf16 = jax.block_until_ready(outs_bf16)

    # Exact path: f32 end-to-end, tight tolerance vs the reference.
    outs_f32 = albert_encoder_forward(
        x, attn_mask, params,
        num_hidden_layers=L, num_attention_heads=NH,
        output_all_encoded_layers=True, compute_dtype=None)
    outs_f32 = jax.block_until_ready(outs_f32)

    refs = _reference_encoder(x, attn_mask, params, L, NH, True)
    assert len(outs_bf16) == L and len(outs_f32) == L
    for o32, obf, r in zip(outs_f32, outs_bf16, refs):
        assert o32.shape == (B, S, H) and obf.shape == (B, S, H)
        err32 = float(jnp.max(jnp.abs(o32 - r)))
        assert err32 < 1e-3, f"f32 kernel mismatch vs reference: {err32}"
        errbf = float(jnp.max(jnp.abs(obf - r)))
        assert errbf < 8e-2, f"bf16 kernel mismatch vs reference: {errbf}"

    print("KERNEL_OK")
</pallas_src>

<mosaic_0001>
module attributes {stable_mosaic.version = 11 : i64} {
  func.func @kernel(%arg0: i32, %arg1: i32, %arg2: i32, %arg3: memref<16x16xf32, #tpu.memory_space<vmem>>, %arg4: memref<32x16xbf16, #tpu.memory_space<vmem>>, %arg5: memref<1x32xf32, #tpu.memory_space<vmem>>, %arg6: memref<16x32xf32, #tpu.memory_space<vmem>>) attributes {dimension_semantics = [#tpu.dimension_semantics<parallel>, #tpu.dimension_semantics<parallel>, #tpu.dimension_semantics<arbitrary>], iteration_bounds = array<i64: 1, 1, 1>, scalar_prefetch = 0 : i64, scratch_operands = 0 : i64, tpu.core_type = #tpu.core_type<tc>, window_params = [{transform_indices = @transform_0, window_bounds = array<i64: 16, 16>}, {transform_indices = @transform_1, window_bounds = array<i64: 32, 16>}, {transform_indices = @transform_2, window_bounds = array<i64: 1, 32>}, {transform_indices = @transform_3, window_bounds = array<i64: 16, 32>}]} {
    %c0 = arith.constant 0 : index
    %c0_0 = arith.constant 0 : index
    %0 = vector.load %arg3[%c0, %c0_0] : memref<16x16xf32, #tpu.memory_space<vmem>>, vector<16x16xf32>
    %c0_1 = arith.constant 0 : index
    %c0_2 = arith.constant 0 : index
    %1 = vector.load %arg4[%c0_1, %c0_2] : memref<32x16xbf16, #tpu.memory_space<vmem>>, vector<32x16xbf16>
    %2 = arith.truncf %0 : vector<16x16xf32> to vector<16x16xbf16>
    %cst = arith.constant dense<0.000000e+00> : vector<16x32xf32>
    %3 = tpu.matmul %2, %1, %cst {dimension_numbers = #tpu.dot_dimension_numbers<[1], [1], [0], [0], [0, 0, 1, 0], [], []>} : vector<16x16xbf16>, vector<32x16xbf16>, vector<16x32xf32> -> vector<16x32xf32>
    %c0_3 = arith.constant 0 : index
    %c0_4 = arith.constant 0 : index
    %4 = vector.load %arg5[%c0_3, %c0_4] : memref<1x32xf32, #tpu.memory_space<vmem>>, vector<1x32xf32>
    %5 = vector.broadcast %4 : vector<1x32xf32> to vector<16x32xf32>
    %6 = arith.addf %3, %5 : vector<16x32xf32>
    %c0_5 = arith.constant 0 : index
    %c0_6 = arith.constant 0 : index
    %7 = vector.load %arg6[%c0_5, %c0_6] : memref<16x32xf32, #tpu.memory_space<vmem>>, vector<16x32xf32>
    tpu.vector_store %arg6[%c0_5, %c0_6], %6 {strides = array<i32>} : memref<16x32xf32, #tpu.memory_space<vmem>>, vector<16x32xf32>,
    return
  }
  func.func @transform_0(%arg0: i32, %arg1: i32, %arg2: i32) -> (i32, i32) {
    %c0_i32 = arith.constant 0 : i32
    return %arg0, %arg2 : i32, i32
  }
  func.func @transform_1(%arg0: i32, %arg1: i32, %arg2: i32) -> (i32, i32) {
    %c0_i32 = arith.constant 0 : i32
    return %arg1, %arg2 : i32, i32
  }
  func.func @transform_2(%arg0: i32, %arg1: i32, %arg2: i32) -> (i32, i32) {
    %c0_i32 = arith.constant 0 : i32
    %c0_i32_0 = arith.constant 0 : i32
    return %c0_i32, %arg1 : i32, i32
  }
  func.func @transform_3(%arg0: i32, %arg1: i32, %arg2: i32) -> (i32, i32) {
    %c0_i32 = arith.constant 0 : i32
    return %arg0, %arg1 : i32, i32
  }
}

module attributes {stable_mosaic.version = 11 : i64} {
  func.func @kernel(%arg0: i32, %arg1: i32, %arg2: i32, %arg3: memref<16x32xf32, #tpu.memory_space<vmem>>, %arg4: memref<96x32xbf16, #tpu.memory_space<vmem>>, %arg5: memref<1x96xf32, #tpu.memory_space<vmem>>, %arg6: memref<16x96xf32, #tpu.memory_space<vmem>>) attributes {dimension_semantics = [#tpu.dimension_semantics<parallel>, #tpu.dimension_semantics<parallel>, #tpu.dimension_semantics<arbitrary>], iteration_bounds = array<i64: 1, 1, 1>, scalar_prefetch = 0 : i64, scratch_operands = 0 : i64, tpu.core_type = #tpu.core_type<tc>, window_params = [{transform_indices = @transform_0, window_bounds = array<i64: 16, 32>}, {transform_indices = @transform_1, window_bounds = array<i64: 96, 32>}, {transform_indices = @transform_2, window_bounds = array<i64: 1, 96>}, {transform_indices = @transform_3, window_bounds = array<i64: 16, 96>}]} {
    %c0 = arith.constant 0 : index
    %c0_0 = arith.constant 0 : index
    %0 = vector.load %arg3[%c0, %c0_0] : memref<16x32xf32, #tpu.memory_space<vmem>>, vector<16x32xf32>
    %c0_1 = arith.constant 0 : index
    %c0_2 = arith.constant 0 : index
    %1 = vector.load %arg4[%c0_1, %c0_2] : memref<96x32xbf16, #tpu.memory_space<vmem>>, vector<96x32xbf16>
    %2 = arith.truncf %0 : vector<16x32xf32> to vector<16x32xbf16>
    %cst = arith.constant dense<0.000000e+00> : vector<16x96xf32>
    %3 = tpu.matmul %2, %1, %cst {dimension_numbers = #tpu.dot_dimension_numbers<[1], [1], [0], [0], [0, 0, 1, 0], [], []>} : vector<16x32xbf16>, vector<96x32xbf16>, vector<16x96xf32> -> vector<16x96xf32>
    %c0_3 = arith.constant 0 : index
    %c0_4 = arith.constant 0 : index
    %4 = vector.load %arg5[%c0_3, %c0_4] : memref<1x96xf32, #tpu.memory_space<vmem>>, vector<1x96xf32>
    %5 = vector.broadcast %4 : vector<1x96xf32> to vector<16x96xf32>
    %6 = arith.addf %3, %5 : vector<16x96xf32>
    %c0_5 = arith.constant 0 : index
    %c0_6 = arith.constant 0 : index
    %7 = vector.load %arg6[%c0_5, %c0_6] : memref<16x96xf32, #tpu.memory_space<vmem>>, vector<16x96xf32>
    tpu.vector_store %arg6[%c0_5, %c0_6], %6 {strides = array<i32>} : memref<16x96xf32, #tpu.memory_space<vmem>>, vector<16x96xf32>,
    return
  }
  func.func @transform_0(%arg0: i32, %arg1: i32, %arg2: i32) -> (i32, i32) {
    %c0_i32 = arith.constant 0 : i32
    return %arg0, %arg2 : i32, i32
  }
  func.func @transform_1(%arg0: i32, %arg1: i32, %arg2: i32) -> (i32, i32) {
    %c0_i32 = arith.constant 0 : i32
    return %arg1, %arg2 : i32, i32
  }
  func.func @transform_2(%arg0: i32, %arg1: i32, %arg2: i32) -> (i32, i32) {
    %c0_i32 = arith.constant 0 : i32
    %c0_i32_0 = arith.constant 0 : i32
    return %c0_i32, %arg1 : i32, i32
  }
  func.func @transform_3(%arg0: i32, %arg1: i32, %arg2: i32) -> (i32, i32) {
    %c0_i32 = arith.constant 0 : i32
    return %arg0, %arg1 : i32, i32
  }
}

module attributes {stable_mosaic.version = 11 : i64} {
  func.func @_attention_kernel(%arg0: i32, %arg1: memref<1x8x96xf32, #tpu.memory_space<vmem>>, %arg2: memref<1x1x8xf32, #tpu.memory_space<vmem>>, %arg3: memref<1x8x32xf32, #tpu.memory_space<vmem>>) attributes {dimension_semantics = [#tpu.dimension_semantics<parallel>], iteration_bounds = array<i64: 2>, scalar_prefetch = 0 : i64, scratch_operands = 0 : i64, tpu.core_type = #tpu.core_type<tc>, window_params = [{transform_indices = @transform_0, window_bounds = array<i64: 1, 8, 96>}, {transform_indices = @transform_1, window_bounds = array<i64: 1, 1, 8>}, {transform_indices = @transform_2, window_bounds = array<i64: 1, 8, 32>}]} {
    %c0 = arith.constant 0 : index
    %c0_0 = arith.constant 0 : index
    %c0_1 = arith.constant 0 : index
    %0 = vector.load %arg2[%c0, %c0_0, %c0_1] : memref<1x1x8xf32, #tpu.memory_space<vmem>>, vector<1x1x8xf32>
    %1 = vector.shape_cast %0 : vector<1x1x8xf32> to vector<1x8xf32>
    %c0_2 = arith.constant 0 : index
    %c0_3 = arith.constant 0 : index
    %c0_4 = arith.constant 0 : index
    %2 = vector.load %arg1[%c0_2, %c0_3, %c0_4] : memref<1x8x96xf32, #tpu.memory_space<vmem>>, vector<1x8x8xf32>
    %3 = vector.shape_cast %2 : vector<1x8x8xf32> to vector<8x8xf32>
    %cst = arith.constant 0.353553385 : f32
    %4 = vector.broadcast %cst : f32 to vector<8x8xf32>
    %5 = arith.mulf %3, %4 : vector<8x8xf32>
    %c0_5 = arith.constant 0 : index
    %c0_6 = arith.constant 0 : index
    %c32 = arith.constant 32 : index
    %6 = vector.load %arg1[%c0_5, %c0_6, %c32] : memref<1x8x96xf32, #tpu.memory_space<vmem>>, vector<1x8x8xf32>
    %7 = vector.shape_cast %6 : vector<1x8x8xf32> to vector<8x8xf32>
    %c0_7 = arith.constant 0 : index
    %c0_8 = arith.constant 0 : index
    %c64 = arith.constant 64 : index
    %8 = vector.load %arg1[%c0_7, %c0_8, %c64] : memref<1x8x96xf32, #tpu.memory_space<vmem>>, vector<1x8x8xf32>
    %9 = vector.shape_cast %8 : vector<1x8x8xf32> to vector<8x8xf32>
    %10 = arith.truncf %5 : vector<8x8xf32> to vector<8x8xbf16>
    %11 = arith.truncf %7 : vector<8x8xf32> to vector<8x8xbf16>
    %cst_9 = arith.constant dense<0.000000e+00> : vector<8x8xf32>
    %12 = tpu.matmul %10, %11, %cst_9 {dimension_numbers = #tpu.dot_dimension_numbers<[1], [1], [0], [0], [0, 0, 1, 0], [], []>} : vector<8x8xbf16>, vector<8x8xbf16>, vector<8x8xf32> -> vector<8x8xf32>
    %13 = vector.broadcast %1 : vector<1x8xf32> to vector<8x8xf32>
    %14 = arith.addf %12, %13 : vector<8x8xf32>
    %cst_10 = arith.constant dense<0xFF800000> : vector<8xf32>
    %15 = vector.multi_reduction <maximumf>, %14, %cst_10 [1] : vector<8x8xf32> to vector<8xf32>
    %16 = vector.shape_cast %15 : vector<8xf32> to vector<8x1xf32>
    %17 = vector.broadcast %16 : vector<8x1xf32> to vector<8x8xf32>
    %18 = arith.subf %14, %17 : vector<8x8xf32>
    %19 = math.exp %18 : vector<8x8xf32>
    %cst_11 = arith.constant dense<0.000000e+00> : vector<8xf32>
    %20 = vector.multi_reduction <add>, %19, %cst_11 [1] : vector<8x8xf32> to vector<8xf32>
    %21 = vector.shape_cast %20 : vector<8xf32> to vector<8x1xf32>
    %22 = tpu.reciprocal %21 {approx = true} : vector<8x1xf32> -> vector<8x1xf32>
    %23 = vector.broadcast %22 : vector<8x1xf32> to vector<8x8xf32>
    %24 = arith.mulf %19, %23 : vector<8x8xf32>
    %25 = arith.truncf %24 : vector<8x8xf32> to vector<8x8xbf16>
    %26 = arith.truncf %9 : vector<8x8xf32> to vector<8x8xbf16>
    %cst_12 = arith.constant dense<0.000000e+00> : vector<8x8xf32>
    %27 = tpu.matmul %25, %26, %cst_12 {dimension_numbers = #tpu.dot_dimension_numbers<[1], [0], [0], [1], [0, 0, 1, 1], [], []>} : vector<8x8xbf16>, vector<8x8xbf16>, vector<8x8xf32> -> vector<8x8xf32>
    %c0_13 = arith.constant 0 : index
    %c0_14 = arith.constant 0 : index
    %c0_15 = arith.constant 0 : index
    %28 = vector.load %arg3[%c0_13, %c0_14, %c0_15] : memref<1x8x32xf32, #tpu.memory_space<vmem>>, vector<1x8x8xf32>
    %29 = vector.shape_cast %28 : vector<1x8x8xf32> to vector<8x8xf32>
    %30 = vector.shape_cast %27 : vector<8x8xf32> to vector<1x8x8xf32>
    tpu.vector_store %arg3[%c0_13, %c0_14, %c0_15], %30 {strides = array<i32>} : memref<1x8x32xf32, #tpu.memory_space<vmem>>, vector<1x8x8xf32>,
    %c0_16 = arith.constant 0 : index
    %c0_17 = arith.constant 0 : index
    %c8 = arith.constant 8 : index
    %31 = vector.load %arg1[%c0_16, %c0_17, %c8] : memref<1x8x96xf32, #tpu.memory_space<vmem>>, vector<1x8x8xf32>
    %32 = vector.shape_cast %31 : vector<1x8x8xf32> to vector<8x8xf32>
    %cst_18 = arith.constant 0.353553385 : f32
    %33 = vector.broadcast %cst_18 : f32 to vector<8x8xf32>
    %34 = arith.mulf %32, %33 : vector<8x8xf32>
    %c0_19 = arith.constant 0 : index
    %c0_20 = arith.constant 0 : index
    %c40 = arith.constant 40 : index
    %35 = vector.load %arg1[%c0_19, %c0_20, %c40] : memref<1x8x96xf32, #tpu.memory_space<vmem>>, vector<1x8x8xf32>
    %36 = vector.shape_cast %35 : vector<1x8x8xf32> to vector<8x8xf32>
    %c0_21 = arith.constant 0 : index
    %c0_22 = arith.constant 0 : index
    %c72 = arith.constant 72 : index
    %37 = vector.load %arg1[%c0_21, %c0_22, %c72] : memref<1x8x96xf32, #tpu.memory_space<vmem>>, vector<1x8x8xf32>
    %38 = vector.shape_cast %37 : vector<1x8x8xf32> to vector<8x8xf32>
    %39 = arith.truncf %34 : vector<8x8xf32> to vector<8x8xbf16>
    %40 = arith.truncf %36 : vector<8x8xf32> to vector<8x8xbf16>
    %cst_23 = arith.constant dense<0.000000e+00> : vector<8x8xf32>
    %41 = tpu.matmul %39, %40, %cst_23 {dimension_numbers = #tpu.dot_dimension_numbers<[1], [1], [0], [0], [0, 0, 1, 0], [], []>} : vector<8x8xbf16>, vector<8x8xbf16>, vector<8x8xf32> -> vector<8x8xf32>
    %42 = vector.broadcast %1 : vector<1x8xf32> to vector<8x8xf32>
    %43 = arith.addf %41, %42 : vector<8x8xf32>
    %cst_24 = arith.constant dense<0xFF800000> : vector<8xf32>
    %44 = vector.multi_reduction <maximumf>, %43, %cst_24 [1] : vector<8x8xf32> to vector<8xf32>
    %45 = vector.shape_cast %44 : vector<8xf32> to vector<8x1xf32>
    %46 = vector.broadcast %45 : vector<8x1xf32> to vector<8x8xf32>
    %47 = arith.subf %43, %46 : vector<8x8xf32>
    %48 = math.exp %47 : vector<8x8xf32>
    %cst_25 = arith.constant dense<0.000000e+00> : vector<8xf32>
    %49 = vector.multi_reduction <add>, %48, %cst_25 [1] : vector<8x8xf32> to vector<8xf32>
    %50 = vector.shape_cast %49 : vector<8xf32> to vector<8x1xf32>
    %51 = tpu.reciprocal %50 {approx = true} : vector<8x1xf32> -> vector<8x1xf32>
    %52 = vector.broadcast %51 : vector<8x1xf32> to vector<8x8xf32>
    %53 = arith.mulf %48, %52 : vector<8x8xf32>
    %54 = arith.truncf %53 : vector<8x8xf32> to vector<8x8xbf16>
    %55 = arith.truncf %38 : vector<8x8xf32> to vector<8x8xbf16>
    %cst_26 = arith.constant dense<0.000000e+00> : vector<8x8xf32>
    %56 = tpu.matmul %54, %55, %cst_26 {dimension_numbers = #tpu.dot_dimension_numbers<[1], [0], [0], [1], [0, 0, 1, 1], [], []>} : vector<8x8xbf16>, vector<8x8xbf16>, vector<8x8xf32> -> vector<8x8xf32>
    %c0_27 = arith.constant 0 : index
    %c0_28 = arith.constant 0 : index
    %c8_29 = arith.constant 8 : index
    %57 = vector.load %arg3[%c0_27, %c0_28, %c8_29] : memref<1x8x32xf32, #tpu.memory_space<vmem>>, vector<1x8x8xf32>
    %58 = vector.shape_cast %57 : vector<1x8x8xf32> to vector<8x8xf32>
    %59 = vector.shape_cast %56 : vector<8x8xf32> to vector<1x8x8xf32>
    tpu.vector_store %arg3[%c0_27, %c0_28, %c8_29], %59 {strides = array<i32>} : memref<1x8x32xf32, #tpu.memory_space<vmem>>, vector<1x8x8xf32>,
    %c0_30 = arith.constant 0 : index
    %c0_31 = arith.constant 0 : index
    %c16 = arith.constant 16 : index
    %60 = vector.load %arg1[%c0_30, %c0_31, %c16] : memref<1x8x96xf32, #tpu.memory_space<vmem>>, vector<1x8x8xf32>
    %61 = vector.shape_cast %60 : vector<1x8x8xf32> to vector<8x8xf32>
    %cst_32 = arith.constant 0.353553385 : f32
    %62 = vector.broadcast %cst_32 : f32 to vector<8x8xf32>
    %63 = arith.mulf %61, %62 : vector<8x8xf32>
    %c0_33 = arith.constant 0 : index
    %c0_34 = arith.constant 0 : index
    %c48 = arith.constant 48 : index
    %64 = vector.load %arg1[%c0_33, %c0_34, %c48] : memref<1x8x96xf32, #tpu.memory_space<vmem>>, vector<1x8x8xf32>
    %65 = vector.shape_cast %64 : vector<1x8x8xf32> to vector<8x8xf32>
    %c0_35 = arith.constant 0 : index
    %c0_36 = arith.constant 0 : index
    %c80 = arith.constant 80 : index
    %66 = vector.load %arg1[%c0_35, %c0_36, %c80] : memref<1x8x96xf32, #tpu.memory_space<vmem>>, vector<1x8x8xf32>
    %67 = vector.shape_cast %66 : vector<1x8x8xf32> to vector<8x8xf32>
    %68 = arith.truncf %63 : vector<8x8xf32> to vector<8x8xbf16>
    %69 = arith.truncf %65 : vector<8x8xf32> to vector<8x8xbf16>
    %cst_37 = arith.constant dense<0.000000e+00> : vector<8x8xf32>
    %70 = tpu.matmul %68, %69, %cst_37 {dimension_numbers = #tpu.dot_dimension_numbers<[1], [1], [0], [0], [0, 0, 1, 0], [], []>} : vector<8x8xbf16>, vector<8x8xbf16>, vector<8x8xf32> -> vector<8x8xf32>
    %71 = vector.broadcast %1 : vector<1x8xf32> to vector<8x8xf32>
    %72 = arith.addf %70, %71 : vector<8x8xf32>
    %cst_38 = arith.constant dense<0xFF800000> : vector<8xf32>
    %73 = vector.multi_reduction <maximumf>, %72, %cst_38 [1] : vector<8x8xf32> to vector<8xf32>
    %74 = vector.shape_cast %73 : vector<8xf32> to vector<8x1xf32>
    %75 = vector.broadcast %74 : vector<8x1xf32> to vector<8x8xf32>
    %76 = arith.subf %72, %75 : vector<8x8xf32>
    %77 = math.exp %76 : vector<8x8xf32>
    %cst_39 = arith.constant dense<0.000000e+00> : vector<8xf32>
    %78 = vector.multi_reduction <add>, %77, %cst_39 [1] : vector<8x8xf32> to vector<8xf32>
    %79 = vector.shape_cast %78 : vector<8xf32> to vector<8x1xf32>
    %80 = tpu.reciprocal %79 {approx = true} : vector<8x1xf32> -> vector<8x1xf32>
    %81 = vector.broadcast %80 : vector<8x1xf32> to vector<8x8xf32>
    %82 = arith.mulf %77, %81 : vector<8x8xf32>
    %83 = arith.truncf %82 : vector<8x8xf32> to vector<8x8xbf16>
    %84 = arith.truncf %67 : vector<8x8xf32> to vector<8x8xbf16>
    %cst_40 = arith.constant dense<0.000000e+00> : vector<8x8xf32>
    %85 = tpu.matmul %83, %84, %cst_40 {dimension_numbers = #tpu.dot_dimension_numbers<[1], [0], [0], [1], [0, 0, 1, 1], [], []>} : vector<8x8xbf16>, vector<8x8xbf16>, vector<8x8xf32> -> vector<8x8xf32>
    %c0_41 = arith.constant 0 : index
    %c0_42 = arith.constant 0 : index
    %c16_43 = arith.constant 16 : index
    %86 = vector.load %arg3[%c0_41, %c0_42, %c16_43] : memref<1x8x32xf32, #tpu.memory_space<vmem>>, vector<1x8x8xf32>
    %87 = vector.shape_cast %86 : vector<1x8x8xf32> to vector<8x8xf32>
    %88 = vector.shape_cast %85 : vector<8x8xf32> to vector<1x8x8xf32>
    tpu.vector_store %arg3[%c0_41, %c0_42, %c16_43], %88 {strides = array<i32>} : memref<1x8x32xf32, #tpu.memory_space<vmem>>, vector<1x8x8xf32>,
    %c0_44 = arith.constant 0 : index
    %c0_45 = arith.constant 0 : index
    %c24 = arith.constant 24 : index
    %89 = vector.load %arg1[%c0_44, %c0_45, %c24] : memref<1x8x96xf32, #tpu.memory_space<vmem>>, vector<1x8x8xf32>
    %90 = vector.shape_cast %89 : vector<1x8x8xf32> to vector<8x8xf32>
    %cst_46 = arith.constant 0.353553385 : f32
    %91 = vector.broadcast %cst_46 : f32 to vector<8x8xf32>
    %92 = arith.mulf %90, %91 : vector<8x8xf32>
    %c0_47 = arith.constant 0 : index
    %c0_48 = arith.constant 0 : index
    %c56 = arith.constant 56 : index
    %93 = vector.load %arg1[%c0_47, %c0_48, %c56] : memref<1x8x96xf32, #tpu.memory_space<vmem>>, vector<1x8x8xf32>
    %94 = vector.shape_cast %93 : vector<1x8x8xf32> to vector<8x8xf32>
    %c0_49 = arith.constant 0 : index
    %c0_50 = arith.constant 0 : index
    %c88 = arith.constant 88 : index
    %95 = vector.load %arg1[%c0_49, %c0_50, %c88] : memref<1x8x96xf32, #tpu.memory_space<vmem>>, vector<1x8x8xf32>
    %96 = vector.shape_cast %95 : vector<1x8x8xf32> to vector<8x8xf32>
    %97 = arith.truncf %92 : vector<8x8xf32> to vector<8x8xbf16>
    %98 = arith.truncf %94 : vector<8x8xf32> to vector<8x8xbf16>
    %cst_51 = arith.constant dense<0.000000e+00> : vector<8x8xf32>
    %99 = tpu.matmul %97, %98, %cst_51 {dimension_numbers = #tpu.dot_dimension_numbers<[1], [1], [0], [0], [0, 0, 1, 0], [], []>} : vector<8x8xbf16>, vector<8x8xbf16>, vector<8x8xf32> -> vector<8x8xf32>
    %100 = vector.broadcast %1 : vector<1x8xf32> to vector<8x8xf32>
    %101 = arith.addf %99, %100 : vector<8x8xf32>
    %cst_52 = arith.constant dense<0xFF800000> : vector<8xf32>
    %102 = vector.multi_reduction <maximumf>, %101, %cst_52 [1] : vector<8x8xf32> to vector<8xf32>
    %103 = vector.shape_cast %102 : vector<8xf32> to vector<8x1xf32>
    %104 = vector.broadcast %103 : vector<8x1xf32> to vector<8x8xf32>
    %105 = arith.subf %101, %104 : vector<8x8xf32>
    %106 = math.exp %105 : vector<8x8xf32>
    %cst_53 = arith.constant dense<0.000000e+00> : vector<8xf32>
    %107 = vector.multi_reduction <add>, %106, %cst_53 [1] : vector<8x8xf32> to vector<8xf32>
    %108 = vector.shape_cast %107 : vector<8xf32> to vector<8x1xf32>
    %109 = tpu.reciprocal %108 {approx = true} : vector<8x1xf32> -> vector<8x1xf32>
    %110 = vector.broadcast %109 : vector<8x1xf32> to vector<8x8xf32>
    %111 = arith.mulf %106, %110 : vector<8x8xf32>
    %112 = arith.truncf %111 : vector<8x8xf32> to vector<8x8xbf16>
    %113 = arith.truncf %96 : vector<8x8xf32> to vector<8x8xbf16>
    %cst_54 = arith.constant dense<0.000000e+00> : vector<8x8xf32>
    %114 = tpu.matmul %112, %113, %cst_54 {dimension_numbers = #tpu.dot_dimension_numbers<[1], [0], [0], [1], [0, 0, 1, 1], [], []>} : vector<8x8xbf16>, vector<8x8xbf16>, vector<8x8xf32> -> vector<8x8xf32>
    %c0_55 = arith.constant 0 : index
    %c0_56 = arith.constant 0 : index
    %c24_57 = arith.constant 24 : index
    %115 = vector.load %arg3[%c0_55, %c0_56, %c24_57] : memref<1x8x32xf32, #tpu.memory_space<vmem>>, vector<1x8x8xf32>
    %116 = vector.shape_cast %115 : vector<1x8x8xf32> to vector<8x8xf32>
    %117 = vector.shape_cast %114 : vector<8x8xf32> to vector<1x8x8xf32>
    tpu.vector_store %arg3[%c0_55, %c0_56, %c24_57], %117 {strides = array<i32>} : memref<1x8x32xf32, #tpu.memory_space<vmem>>, vector<1x8x8xf32>,
    return
  }
  func.func @transform_0(%arg0: i32) -> (i32, i32, i32) {
    %c0_i32 = arith.constant 0 : i32
    %c0_i32_0 = arith.constant 0 : i32
    %c0_i32_1 = arith.constant 0 : i32
    return %arg0, %c0_i32, %c0_i32_0 : i32, i32, i32
  }
  func.func @transform_1(%arg0: i32) -> (i32, i32, i32) {
    %c0_i32 = arith.constant 0 : i32
    %c0_i32_0 = arith.constant 0 : i32
    %c0_i32_1 = arith.constant 0 : i32
    return %arg0, %c0_i32, %c0_i32_0 : i32, i32, i32
  }
  func.func @transform_2(%arg0: i32) -> (i32, i32, i32) {
    %c0_i32 = arith.constant 0 : i32
    %c0_i32_0 = arith.constant 0 : i32
    %c0_i32_1 = arith.constant 0 : i32
    return %arg0, %c0_i32, %c0_i32_0 : i32, i32, i32
  }
}

module attributes {stable_mosaic.version = 11 : i64} {
  func.func @kernel(%arg0: i32, %arg1: i32, %arg2: i32, %arg3: memref<16x32xf32, #tpu.memory_space<vmem>>, %arg4: memref<32x32xbf16, #tpu.memory_space<vmem>>, %arg5: memref<1x32xf32, #tpu.memory_space<vmem>>, %arg6: memref<16x32xf32, #tpu.memory_space<vmem>>, %arg7: memref<1x32xf32, #tpu.memory_space<vmem>>, %arg8: memref<1x32xf32, #tpu.memory_space<vmem>>, %arg9: memref<16x32xf32, #tpu.memory_space<vmem>>) attributes {dimension_semantics = [#tpu.dimension_semantics<parallel>, #tpu.dimension_semantics<parallel>, #tpu.dimension_semantics<arbitrary>], iteration_bounds = array<i64: 1, 1, 1>, scalar_prefetch = 0 : i64, scratch_operands = 0 : i64, tpu.core_type = #tpu.core_type<tc>, window_params = [{transform_indices = @transform_0, window_bounds = array<i64: 16, 32>}, {transform_indices = @transform_1, window_bounds = array<i64: 32, 32>}, {transform_indices = @transform_2, window_bounds = array<i64: 1, 32>}, {transform_indices = @transform_3, window_bounds = array<i64: 16, 32>}, {transform_indices = @transform_4, window_bounds = array<i64: 1, 32>}, {transform_indices = @transform_5, window_bounds = array<i64: 1, 32>}, {transform_indices = @transform_6, window_bounds = array<i64: 16, 32>}]} {
    %c0 = arith.constant 0 : index
    %c0_0 = arith.constant 0 : index
    %0 = vector.load %arg3[%c0, %c0_0] : memref<16x32xf32, #tpu.memory_space<vmem>>, vector<16x32xf32>
    %c0_1 = arith.constant 0 : index
    %c0_2 = arith.constant 0 : index
    %1 = vector.load %arg4[%c0_1, %c0_2] : memref<32x32xbf16, #tpu.memory_space<vmem>>, vector<32x32xbf16>
    %2 = arith.truncf %0 : vector<16x32xf32> to vector<16x32xbf16>
    %cst = arith.constant dense<0.000000e+00> : vector<16x32xf32>
    %3 = tpu.matmul %2, %1, %cst {dimension_numbers = #tpu.dot_dimension_numbers<[1], [1], [0], [0], [0, 0, 1, 0], [], []>} : vector<16x32xbf16>, vector<32x32xbf16>, vector<16x32xf32> -> vector<16x32xf32>
    %c0_3 = arith.constant 0 : index
    %c0_4 = arith.constant 0 : index
    %4 = vector.load %arg5[%c0_3, %c0_4] : memref<1x32xf32, #tpu.memory_space<vmem>>, vector<1x32xf32>
    %5 = vector.broadcast %4 : vector<1x32xf32> to vector<16x32xf32>
    %6 = arith.addf %3, %5 : vector<16x32xf32>
    %c0_5 = arith.constant 0 : index
    %c0_6 = arith.constant 0 : index
    %7 = vector.load %arg6[%c0_5, %c0_6] : memref<16x32xf32, #tpu.memory_space<vmem>>, vector<16x32xf32>
    %8 = arith.addf %6, %7 : vector<16x32xf32>
    %cst_7 = arith.constant dense<0.000000e+00> : vector<16xf32>
    %9 = vector.multi_reduction <add>, %8, %cst_7 [1] : vector<16x32xf32> to vector<16xf32>
    %10 = vector.shape_cast %9 : vector<16xf32> to vector<16x1xf32>
    %11 = arith.mulf %8, %8 : vector<16x32xf32>
    %cst_8 = arith.constant dense<0.000000e+00> : vector<16xf32>
    %12 = vector.multi_reduction <add>, %11, %cst_8 [1] : vector<16x32xf32> to vector<16xf32>
    %13 = vector.shape_cast %12 : vector<16xf32> to vector<16x1xf32>
    %cst_9 = arith.constant 3.125000e-02 : f32
    %14 = vector.broadcast %cst_9 : f32 to vector<16x1xf32>
    %15 = arith.mulf %10, %14 : vector<16x1xf32>
    %cst_10 = arith.constant 3.125000e-02 : f32
    %16 = vector.broadcast %cst_10 : f32 to vector<16x1xf32>
    %17 = arith.mulf %13, %16 : vector<16x1xf32>
    %18 = arith.mulf %15, %15 : vector<16x1xf32>
    %19 = arith.subf %17, %18 : vector<16x1xf32>
    %cst_11 = arith.constant 0.000000e+00 : f32
    %20 = vector.broadcast %cst_11 : f32 to vector<16x1xf32>
    %21 = arith.maximumf %19, %20 : vector<16x1xf32>
    %22 = vector.broadcast %15 : vector<16x1xf32> to vector<16x32xf32>
    %23 = arith.subf %8, %22 : vector<16x32xf32>
    %cst_12 = arith.constant 9.99999974E-6 : f32
    %24 = vector.broadcast %cst_12 : f32 to vector<16x1xf32>
    %25 = arith.addf %21, %24 : vector<16x1xf32>
    %26 = math.rsqrt %25 : vector<16x1xf32>
    %27 = vector.broadcast %26 : vector<16x1xf32> to vector<16x32xf32>
    %28 = arith.mulf %23, %27 : vector<16x32xf32>
    %c0_13 = arith.constant 0 : index
    %c0_14 = arith.constant 0 : index
    %29 = vector.load %arg7[%c0_13, %c0_14] : memref<1x32xf32, #tpu.memory_space<vmem>>, vector<1x32xf32>
    %30 = vector.broadcast %29 : vector<1x32xf32> to vector<16x32xf32>
    %31 = arith.mulf %28, %30 : vector<16x32xf32>
    %c0_15 = arith.constant 0 : index
    %c0_16 = arith.constant 0 : index
    %32 = vector.load %arg8[%c0_15, %c0_16] : memref<1x32xf32, #tpu.memory_space<vmem>>, vector<1x32xf32>
    %33 = vector.broadcast %32 : vector<1x32xf32> to vector<16x32xf32>
    %34 = arith.addf %31, %33 : vector<16x32xf32>
    %c0_17 = arith.constant 0 : index
    %c0_18 = arith.constant 0 : index
    %35 = vector.load %arg9[%c0_17, %c0_18] : memref<16x32xf32, #tpu.memory_space<vmem>>, vector<16x32xf32>
    tpu.vector_store %arg9[%c0_17, %c0_18], %34 {strides = array<i32>} : memref<16x32xf32, #tpu.memory_space<vmem>>, vector<16x32xf32>,
    return
  }
  func.func @transform_0(%arg0: i32, %arg1: i32, %arg2: i32) -> (i32, i32) {
    %c0_i32 = arith.constant 0 : i32
    return %arg0, %arg2 : i32, i32
  }
  func.func @transform_1(%arg0: i32, %arg1: i32, %arg2: i32) -> (i32, i32) {
    %c0_i32 = arith.constant 0 : i32
    return %arg1, %arg2 : i32, i32
  }
  func.func @transform_2(%arg0: i32, %arg1: i32, %arg2: i32) -> (i32, i32) {
    %c0_i32 = arith.constant 0 : i32
    %c0_i32_0 = arith.constant 0 : i32
    return %c0_i32, %arg1 : i32, i32
  }
  func.func @transform_3(%arg0: i32, %arg1: i32, %arg2: i32) -> (i32, i32) {
    %c0_i32 = arith.constant 0 : i32
    return %arg0, %arg1 : i32, i32
  }
  func.func @transform_4(%arg0: i32, %arg1: i32, %arg2: i32) -> (i32, i32) {
    %c0_i32 = arith.constant 0 : i32
    %c0_i32_0 = arith.constant 0 : i32
    return %c0_i32, %arg1 : i32, i32
  }
  func.func @transform_5(%arg0: i32, %arg1: i32, %arg2: i32) -> (i32, i32) {
    %c0_i32 = arith.constant 0 : i32
    %c0_i32_0 = arith.constant 0 : i32
    return %c0_i32, %arg1 : i32, i32
  }
  func.func @transform_6(%arg0: i32, %arg1: i32, %arg2: i32) -> (i32, i32) {
    %c0_i32 = arith.constant 0 : i32
    return %arg0, %arg1 : i32, i32
  }
}

module attributes {stable_mosaic.version = 11 : i64} {
  func.func @kernel(%arg0: i32, %arg1: i32, %arg2: i32, %arg3: memref<16x32xf32, #tpu.memory_space<vmem>>, %arg4: memref<64x32xbf16, #tpu.memory_space<vmem>>, %arg5: memref<1x64xf32, #tpu.memory_space<vmem>>, %arg6: memref<16x64xf32, #tpu.memory_space<vmem>>) attributes {dimension_semantics = [#tpu.dimension_semantics<parallel>, #tpu.dimension_semantics<parallel>, #tpu.dimension_semantics<arbitrary>], iteration_bounds = array<i64: 1, 1, 1>, scalar_prefetch = 0 : i64, scratch_operands = 0 : i64, tpu.core_type = #tpu.core_type<tc>, window_params = [{transform_indices = @transform_0, window_bounds = array<i64: 16, 32>}, {transform_indices = @transform_1, window_bounds = array<i64: 64, 32>}, {transform_indices = @transform_2, window_bounds = array<i64: 1, 64>}, {transform_indices = @transform_3, window_bounds = array<i64: 16, 64>}]} {
    %c0 = arith.constant 0 : index
    %c0_0 = arith.constant 0 : index
    %0 = vector.load %arg3[%c0, %c0_0] : memref<16x32xf32, #tpu.memory_space<vmem>>, vector<16x32xf32>
    %c0_1 = arith.constant 0 : index
    %c0_2 = arith.constant 0 : index
    %1 = vector.load %arg4[%c0_1, %c0_2] : memref<64x32xbf16, #tpu.memory_space<vmem>>, vector<64x32xbf16>
    %2 = arith.truncf %0 : vector<16x32xf32> to vector<16x32xbf16>
    %cst = arith.constant dense<0.000000e+00> : vector<16x64xf32>
    %3 = tpu.matmul %2, %1, %cst {dimension_numbers = #tpu.dot_dimension_numbers<[1], [1], [0], [0], [0, 0, 1, 0], [], []>} : vector<16x32xbf16>, vector<64x32xbf16>, vector<16x64xf32> -> vector<16x64xf32>
    %c0_3 = arith.constant 0 : index
    %c0_4 = arith.constant 0 : index
    %4 = vector.load %arg5[%c0_3, %c0_4] : memref<1x64xf32, #tpu.memory_space<vmem>>, vector<1x64xf32>
    %5 = vector.broadcast %4 : vector<1x64xf32> to vector<16x64xf32>
    %6 = arith.addf %3, %5 : vector<16x64xf32>
    %cst_5 = arith.constant 1.702000e+00 : f32
    %7 = vector.broadcast %cst_5 : f32 to vector<16x64xf32>
    %8 = arith.mulf %7, %6 : vector<16x64xf32>
    %9 = arith.negf %8 : vector<16x64xf32>
    %10 = math.exp %9 : vector<16x64xf32>
    %cst_6 = arith.constant 1.000000e+00 : f32
    %11 = vector.broadcast %cst_6 : f32 to vector<16x64xf32>
    %12 = arith.addf %11, %10 : vector<16x64xf32>
    %13 = arith.divf %11, %12 : vector<16x64xf32>
    %14 = arith.mulf %6, %13 : vector<16x64xf32>
    %c0_7 = arith.constant 0 : index
    %c0_8 = arith.constant 0 : index
    %15 = vector.load %arg6[%c0_7, %c0_8] : memref<16x64xf32, #tpu.memory_space<vmem>>, vector<16x64xf32>
    tpu.vector_store %arg6[%c0_7, %c0_8], %14 {strides = array<i32>} : memref<16x64xf32, #tpu.memory_space<vmem>>, vector<16x64xf32>,
    return
  }
  func.func @transform_0(%arg0: i32, %arg1: i32, %arg2: i32) -> (i32, i32) {
    %c0_i32 = arith.constant 0 : i32
    return %arg0, %arg2 : i32, i32
  }
  func.func @transform_1(%arg0: i32, %arg1: i32, %arg2: i32) -> (i32, i32) {
    %c0_i32 = arith.constant 0 : i32
    return %arg1, %arg2 : i32, i32
  }
  func.func @transform_2(%arg0: i32, %arg1: i32, %arg2: i32) -> (i32, i32) {
    %c0_i32 = arith.constant 0 : i32
    %c0_i32_0 = arith.constant 0 : i32
    return %c0_i32, %arg1 : i32, i32
  }
  func.func @transform_3(%arg0: i32, %arg1: i32, %arg2: i32) -> (i32, i32) {
    %c0_i32 = arith.constant 0 : i32
    return %arg0, %arg1 : i32, i32
  }
}

module attributes {stable_mosaic.version = 11 : i64} {
  func.func @kernel(%arg0: i32, %arg1: i32, %arg2: i32, %arg3: memref<16x64xf32, #tpu.memory_space<vmem>>, %arg4: memref<32x64xbf16, #tpu.memory_space<vmem>>, %arg5: memref<1x32xf32, #tpu.memory_space<vmem>>, %arg6: memref<16x32xf32, #tpu.memory_space<vmem>>, %arg7: memref<1x32xf32, #tpu.memory_space<vmem>>, %arg8: memref<1x32xf32, #tpu.memory_space<vmem>>, %arg9: memref<16x32xf32, #tpu.memory_space<vmem>>) attributes {dimension_semantics = [#tpu.dimension_semantics<parallel>, #tpu.dimension_semantics<parallel>, #tpu.dimension_semantics<arbitrary>], iteration_bounds = array<i64: 1, 1, 1>, scalar_prefetch = 0 : i64, scratch_operands = 0 : i64, tpu.core_type = #tpu.core_type<tc>, window_params = [{transform_indices = @transform_0, window_bounds = array<i64: 16, 64>}, {transform_indices = @transform_1, window_bounds = array<i64: 32, 64>}, {transform_indices = @transform_2, window_bounds = array<i64: 1, 32>}, {transform_indices = @transform_3, window_bounds = array<i64: 16, 32>}, {transform_indices = @transform_4, window_bounds = array<i64: 1, 32>}, {transform_indices = @transform_5, window_bounds = array<i64: 1, 32>}, {transform_indices = @transform_6, window_bounds = array<i64: 16, 32>}]} {
    %c0 = arith.constant 0 : index
    %c0_0 = arith.constant 0 : index
    %0 = vector.load %arg3[%c0, %c0_0] : memref<16x64xf32, #tpu.memory_space<vmem>>, vector<16x64xf32>
    %c0_1 = arith.constant 0 : index
    %c0_2 = arith.constant 0 : index
    %1 = vector.load %arg4[%c0_1, %c0_2] : memref<32x64xbf16, #tpu.memory_space<vmem>>, vector<32x64xbf16>
    %2 = arith.truncf %0 : vector<16x64xf32> to vector<16x64xbf16>
    %cst = arith.constant dense<0.000000e+00> : vector<16x32xf32>
    %3 = tpu.matmul %2, %1, %cst {dimension_numbers = #tpu.dot_dimension_numbers<[1], [1], [0], [0], [0, 0, 1, 0], [], []>} : vector<16x64xbf16>, vector<32x64xbf16>, vector<16x32xf32> -> vector<16x32xf32>
    %c0_3 = arith.constant 0 : index
    %c0_4 = arith.constant 0 : index
    %4 = vector.load %arg5[%c0_3, %c0_4] : memref<1x32xf32, #tpu.memory_space<vmem>>, vector<1x32xf32>
    %5 = vector.broadcast %4 : vector<1x32xf32> to vector<16x32xf32>
    %6 = arith.addf %3, %5 : vector<16x32xf32>
    %c0_5 = arith.constant 0 : index
    %c0_6 = arith.constant 0 : index
    %7 = vector.load %arg6[%c0_5, %c0_6] : memref<16x32xf32, #tpu.memory_space<vmem>>, vector<16x32xf32>
    %8 = arith.addf %6, %7 : vector<16x32xf32>
    %cst_7 = arith.constant dense<0.000000e+00> : vector<16xf32>
    %9 = vector.multi_reduction <add>, %8, %cst_7 [1] : vector<16x32xf32> to vector<16xf32>
    %10 = vector.shape_cast %9 : vector<16xf32> to vector<16x1xf32>
    %11 = arith.mulf %8, %8 : vector<16x32xf32>
    %cst_8 = arith.constant dense<0.000000e+00> : vector<16xf32>
    %12 = vector.multi_reduction <add>, %11, %cst_8 [1] : vector<16x32xf32> to vector<16xf32>
    %13 = vector.shape_cast %12 : vector<16xf32> to vector<16x1xf32>
    %cst_9 = arith.constant 3.125000e-02 : f32
    %14 = vector.broadcast %cst_9 : f32 to vector<16x1xf32>
    %15 = arith.mulf %10, %14 : vector<16x1xf32>
    %cst_10 = arith.constant 3.125000e-02 : f32
    %16 = vector.broadcast %cst_10 : f32 to vector<16x1xf32>
    %17 = arith.mulf %13, %16 : vector<16x1xf32>
    %18 = arith.mulf %15, %15 : vector<16x1xf32>
    %19 = arith.subf %17, %18 : vector<16x1xf32>
    %cst_11 = arith.constant 0.000000e+00 : f32
    %20 = vector.broadcast %cst_11 : f32 to vector<16x1xf32>
    %21 = arith.maximumf %19, %20 : vector<16x1xf32>
    %22 = vector.broadcast %15 : vector<16x1xf32> to vector<16x32xf32>
    %23 = arith.subf %8, %22 : vector<16x32xf32>
    %cst_12 = arith.constant 9.99999974E-6 : f32
    %24 = vector.broadcast %cst_12 : f32 to vector<16x1xf32>
    %25 = arith.addf %21, %24 : vector<16x1xf32>
    %26 = math.rsqrt %25 : vector<16x1xf32>
    %27 = vector.broadcast %26 : vector<16x1xf32> to vector<16x32xf32>
    %28 = arith.mulf %23, %27 : vector<16x32xf32>
    %c0_13 = arith.constant 0 : index
    %c0_14 = arith.constant 0 : index
    %29 = vector.load %arg7[%c0_13, %c0_14] : memref<1x32xf32, #tpu.memory_space<vmem>>, vector<1x32xf32>
    %30 = vector.broadcast %29 : vector<1x32xf32> to vector<16x32xf32>
    %31 = arith.mulf %28, %30 : vector<16x32xf32>
    %c0_15 = arith.constant 0 : index
    %c0_16 = arith.constant 0 : index
    %32 = vector.load %arg8[%c0_15, %c0_16] : memref<1x32xf32, #tpu.memory_space<vmem>>, vector<1x32xf32>
    %33 = vector.broadcast %32 : vector<1x32xf32> to vector<16x32xf32>
    %34 = arith.addf %31, %33 : vector<16x32xf32>
    %c0_17 = arith.constant 0 : index
    %c0_18 = arith.constant 0 : index
    %35 = vector.load %arg9[%c0_17, %c0_18] : memref<16x32xf32, #tpu.memory_space<vmem>>, vector<16x32xf32>
    tpu.vector_store %arg9[%c0_17, %c0_18], %34 {strides = array<i32>} : memref<16x32xf32, #tpu.memory_space<vmem>>, vector<16x32xf32>,
    return
  }
  func.func @transform_0(%arg0: i32, %arg1: i32, %arg2: i32) -> (i32, i32) {
    %c0_i32 = arith.constant 0 : i32
    return %arg0, %arg2 : i32, i32
  }
  func.func @transform_1(%arg0: i32, %arg1: i32, %arg2: i32) -> (i32, i32) {
    %c0_i32 = arith.constant 0 : i32
    return %arg1, %arg2 : i32, i32
  }
  func.func @transform_2(%arg0: i32, %arg1: i32, %arg2: i32) -> (i32, i32) {
    %c0_i32 = arith.constant 0 : i32
    %c0_i32_0 = arith.constant 0 : i32
    return %c0_i32, %arg1 : i32, i32
  }
  func.func @transform_3(%arg0: i32, %arg1: i32, %arg2: i32) -> (i32, i32) {
    %c0_i32 = arith.constant 0 : i32
    return %arg0, %arg1 : i32, i32
  }
  func.func @transform_4(%arg0: i32, %arg1: i32, %arg2: i32) -> (i32, i32) {
    %c0_i32 = arith.constant 0 : i32
    %c0_i32_0 = arith.constant 0 : i32
    return %c0_i32, %arg1 : i32, i32
  }
  func.func @transform_5(%arg0: i32, %arg1: i32, %arg2: i32) -> (i32, i32) {
    %c0_i32 = arith.constant 0 : i32
    %c0_i32_0 = arith.constant 0 : i32
    return %c0_i32, %arg1 : i32, i32
  }
  func.func @transform_6(%arg0: i32, %arg1: i32, %arg2: i32) -> (i32, i32) {
    %c0_i32 = arith.constant 0 : i32
    return %arg0, %arg1 : i32, i32
  }
}

module attributes {stable_mosaic.version = 11 : i64} {
  func.func @kernel(%arg0: i32, %arg1: i32, %arg2: i32, %arg3: memref<16x64xf32, #tpu.memory_space<vmem>>, %arg4: memref<32x64xbf16, #tpu.memory_space<vmem>>, %arg5: memref<1x32xf32, #tpu.memory_space<vmem>>, %arg6: memref<16x32xf32, #tpu.memory_space<vmem>>, %arg7: memref<1x32xf32, #tpu.memory_space<vmem>>, %arg8: memref<1x32xf32, #tpu.memory_space<vmem>>, %arg9: memref<16x32xf32, #tpu.memory_space<vmem>>) attributes {dimension_semantics = [#tpu.dimension_semantics<parallel>, #tpu.dimension_semantics<parallel>, #tpu.dimension_semantics<arbitrary>], iteration_bounds = array<i64: 1, 1, 1>, scalar_prefetch = 0 : i64, scratch_operands = 0 : i64, tpu.core_type = #tpu.core_type<tc>, window_params = [{transform_indices = @transform_0, window_bounds = array<i64: 16, 64>}, {transform_indices = @transform_1, window_bounds = array<i64: 32, 64>}, {transform_indices = @transform_2, window_bounds = array<i64: 1, 32>}, {transform_indices = @transform_3, window_bounds = array<i64: 16, 32>}, {transform_indices = @transform_4, window_bounds = array<i64: 1, 32>}, {transform_indices = @transform_5, window_bounds = array<i64: 1, 32>}, {transform_indices = @transform_6, window_bounds = array<i64: 16, 32>}]} {
    %c0 = arith.constant 0 : index
    %c0_0 = arith.constant 0 : index
    %0 = vector.load %arg3[%c0, %c0_0] : memref<16x64xf32, #tpu.memory_space<vmem>>, vector<16x64xf32>
    %c0_1 = arith.constant 0 : index
    %c0_2 = arith.constant 0 : index
    %1 = vector.load %arg4[%c0_1, %c0_2] : memref<32x64xbf16, #tpu.memory_space<vmem>>, vector<32x64xbf16>
    %2 = arith.truncf %0 : vector<16x64xf32> to vector<16x64xbf16>
    %cst = arith.constant dense<0.000000e+00> : vector<16x32xf32>
    %3 = tpu.matmul %2, %1, %cst {dimension_numbers = #tpu.dot_dimension_numbers<[1], [1], [0], [0], [0, 0, 1, 0], [], []>} : vector<16x64xbf16>, vector<32x64xbf16>, vector<16x32xf32> -> vector<16x32xf32>
    %c0_3 = arith.constant 0 : index
    %c0_4 = arith.constant 0 : index
    %4 = vector.load %arg5[%c0_3, %c0_4] : memref<1x32xf32, #tpu.memory_space<vmem>>, vector<1x32xf32>
    %5 = vector.broadcast %4 : vector<1x32xf32> to vector<16x32xf32>
    %6 = arith.addf %3, %5 : vector<16x32xf32>
    %c0_5 = arith.constant 0 : index
    %c0_6 = arith.constant 0 : index
    %7 = vector.load %arg6[%c0_5, %c0_6] : memref<16x32xf32, #tpu.memory_space<vmem>>, vector<16x32xf32>
    %8 = arith.addf %6, %7 : vector<16x32xf32>
    %cst_7 = arith.constant dense<0.000000e+00> : vector<16xf32>
    %9 = vector.multi_reduction <add>, %8, %cst_7 [1] : vector<16x32xf32> to vector<16xf32>
    %10 = vector.shape_cast %9 : vector<16xf32> to vector<16x1xf32>
    %11 = arith.mulf %8, %8 : vector<16x32xf32>
    %cst_8 = arith.constant dense<0.000000e+00> : vector<16xf32>
    %12 = vector.multi_reduction <add>, %11, %cst_8 [1] : vector<16x32xf32> to vector<16xf32>
    %13 = vector.shape_cast %12 : vector<16xf32> to vector<16x1xf32>
    %cst_9 = arith.constant 3.125000e-02 : f32
    %14 = vector.broadcast %cst_9 : f32 to vector<16x1xf32>
    %15 = arith.mulf %10, %14 : vector<16x1xf32>
    %cst_10 = arith.constant 3.125000e-02 : f32
    %16 = vector.broadcast %cst_10 : f32 to vector<16x1xf32>
    %17 = arith.mulf %13, %16 : vector<16x1xf32>
    %18 = arith.mulf %15, %15 : vector<16x1xf32>
    %19 = arith.subf %17, %18 : vector<16x1xf32>
    %cst_11 = arith.constant 0.000000e+00 : f32
    %20 = vector.broadcast %cst_11 : f32 to vector<16x1xf32>
    %21 = arith.maximumf %19, %20 : vector<16x1xf32>
    %22 = vector.broadcast %15 : vector<16x1xf32> to vector<16x32xf32>
    %23 = arith.subf %8, %22 : vector<16x32xf32>
    %cst_12 = arith.constant 9.99999974E-6 : f32
    %24 = vector.broadcast %cst_12 : f32 to vector<16x1xf32>
    %25 = arith.addf %21, %24 : vector<16x1xf32>
    %26 = math.rsqrt %25 : vector<16x1xf32>
    %27 = vector.broadcast %26 : vector<16x1xf32> to vector<16x32xf32>
    %28 = arith.mulf %23, %27 : vector<16x32xf32>
    %c0_13 = arith.constant 0 : index
    %c0_14 = arith.constant 0 : index
    %29 = vector.load %arg7[%c0_13, %c0_14] : memref<1x32xf32, #tpu.memory_space<vmem>>, vector<1x32xf32>
    %30 = vector.broadcast %29 : vector<1x32xf32> to vector<16x32xf32>
    %31 = arith.mulf %28, %30 : vector<16x32xf32>
    %c0_15 = arith.constant 0 : index
    %c0_16 = arith.constant 0 : index
    %32 = vector.load %arg8[%c0_15, %c0_16] : memref<1x32xf32, #tpu.memory_space<vmem>>, vector<1x32xf32>
    %33 = vector.broadcast %32 : vector<1x32xf32> to vector<16x32xf32>
    %34 = arith.addf %31, %33 : vector<16x32xf32>
    %c0_17 = arith.constant 0 : index
    %c0_18 = arith.constant 0 : index
    %35 = vector.load %arg9[%c0_17, %c0_18] : memref<16x32xf32, #tpu.memory_space<vmem>>, vector<16x32xf32>
    tpu.vector_store %arg9[%c0_17, %c0_18], %34 {strides = array<i32>} : memref<16x32xf32, #tpu.memory_space<vmem>>, vector<16x32xf32>,
    return
  }
  func.func @transform_0(%arg0: i32, %arg1: i32, %arg2: i32) -> (i32, i32) {
    %c0_i32 = arith.constant 0 : i32
    return %arg0, %arg2 : i32, i32
  }
  func.func @transform_1(%arg0: i32, %arg1: i32, %arg2: i32) -> (i32, i32) {
    %c0_i32 = arith.constant 0 : i32
    return %arg1, %arg2 : i32, i32
  }
  func.func @transform_2(%arg0: i32, %arg1: i32, %arg2: i32) -> (i32, i32) {
    %c0_i32 = arith.constant 0 : i32
    %c0_i32_0 = arith.constant 0 : i32
    return %c0_i32, %arg1 : i32, i32
  }
  func.func @transform_3(%arg0: i32, %arg1: i32, %arg2: i32) -> (i32, i32) {
    %c0_i32 = arith.constant 0 : i32
    return %arg0, %arg1 : i32, i32
  }
  func.func @transform_4(%arg0: i32, %arg1: i32, %arg2: i32) -> (i32, i32) {
    %c0_i32 = arith.constant 0 : i32
    %c0_i32_0 = arith.constant 0 : i32
    return %c0_i32, %arg1 : i32, i32
  }
  func.func @transform_5(%arg0: i32, %arg1: i32, %arg2: i32) -> (i32, i32) {
    %c0_i32 = arith.constant 0 : i32
    %c0_i32_0 = arith.constant 0 : i32
    return %c0_i32, %arg1 : i32, i32
  }
  func.func @transform_6(%arg0: i32, %arg1: i32, %arg2: i32) -> (i32, i32) {
    %c0_i32 = arith.constant 0 : i32
    return %arg0, %arg1 : i32, i32
  }
}

</mosaic_0001>

<bundles_post_ra>
// kernel: albert_encoder_forward.12
= control target key start
LH: loop header
LB: loop body
LE: loop exit
PB: predicated region body
PF: predicated region fallthrough
CT: control target
= control target key end

     0   :  { %vm67_vm0 = vcmask 261120   ;;  %v176_v0 = vmov 0.0   ;;  %vm177_vm1 = vmmov 0   ;;  %vm130_vm2 = vcmask 785408   ;;  %s238_s1 = inlined_call_operand.vmem [shape: bf16[96,32], index: 1, kind: input, shape index: {}]   ;;  %s239_s0 = inlined_call_operand.vmem [shape: f32[16,32], index: 0, kind: input, shape index: {}]   ;;  %s240_s2 = inlined_call_operand.vmem [shape: f32[1,96], index: 2, kind: input, shape index: {}]   ;;  %s241_s3 = inlined_call_operand.vmem [shape: f32[16,96], index: 3, kind: output, shape index: {}]  }
   0x1   :  { %152 = vmatprep.subr.bf16.mxu0 %v176_v0  ;;  %v170_v1 = vld [vmem:[%s238_s1] sm:$0xff]   ;;  %164 = vmatprep.mubr.msk.bf16.mxu0 %vm177_vm1, %v176_v0  ;;  %v171_v3 = vld [vmem:[%s238_s1 + $0x8] sm:$0xff]   ;;  %v172_v5 = vld [vmem:[%s238_s1 + $0x10] sm:$0xff]  }
   0x2   :  { %v72_v2 = vsel %vm67_vm0, %v170_v1, 0  ;;  %v75_v4 = vsel %vm67_vm0, %v171_v3, 0  ;;  %v78_v6 = vsel %vm67_vm0, %v172_v5, 0  ;;  %v173_v7 = vld [vmem:[%s238_s1 + $0x18] sm:$0xff]   ;;  %v174_v9 = vld [vmem:[%s238_s1 + $0x20] sm:$0xff]   ;;  %v175_v11 = vld [vmem:[%s238_s1 + $0x28] sm:$0xff]  }
   0x3   :  { %153 = vmatpush3.bf16.xpose.msra.mxu0 %v72_v2  ;;  %v81_v8 = vsel %vm67_vm0, %v173_v7, 0  ;;  %v84_v10 = vsel %vm67_vm0, %v174_v9, 0  ;;  %v87_v12 = vsel %vm67_vm0, %v175_v11, 0  ;;  %v15_v13 = vld [vmem:[%s239_s0] sm:$0xff]  ;;  %v16_v14 = vld [vmem:[%s239_s0 + $0x8] sm:$0xff] }
   0x4   :  { %154 = vmatprep.subr.bf16.mxu0 %v176_v0  ;;  %v29_v15 = vpack.c.bf16 %v16_v14, %v15_v13  ;;  %v137_v16 = vld [vmem:[%s240_s2] ss:$0 sm:$0xff] }
   0xb   :  { %155 = vmatpush3.bf16.xpose.msra.mxu0 %v75_v4 }
   0xc   :  { %156 = vmatprep.subr.bf16.mxu0 %v176_v0 }
  0x13   :  { %157 = vmatpush3.bf16.xpose.msra.mxu0 %v78_v6 }
  0x14   :  { %158 = vmatprep.subr.bf16.mxu0 %v176_v0 }
  0x1b   :  { %159 = vmatpush3.bf16.xpose.msra.mxu0 %v81_v8 }
  0x1c   :  { %160 = vmatprep.subr.bf16.mxu0 %v176_v0 }
  0x23   :  { %161 = vmatpush3.bf16.xpose.msra.mxu0 %v84_v10 }
  0x24   :  { %162 = vmatprep.subr.bf16.mxu0 %v176_v0 }
  0x2b   :  { %163 = vmatpush3.bf16.xpose.msra.mxu0 %v87_v12 }
  0x32   :  { %165 = vmatmul.mubr.msk.bf16.vlgmr.msra.gmra.mrb[0].mxu0 %vm67_vm0, %v29_v15 }
 0x105   :  { %v123_v17 = vpop.f32.mrb[0].mxu0 }
 0x106   :  { %v124_v18 = vadd.f32 %v137_v16, %v123_v17  ;;  %v166_v19 = vpop.f32.mrb[1].mxu0 }
 0x107   :  { %v126_v20 = vpop.f32.mrb[2].mxu0 }
 0x108   :  { %131 = vst.msk [vmem:[%s241_s3] sm:$0xff] %vm130_vm2, %v124_v18  ;;  %v127_v21 = vadd.f32 %v137_v16, %v126_v20  ;;  %v167_v22 = vpop.f32.mrb[3].mxu0 }
 0x10a   :  { %132 = vst.msk [vmem:[%s241_s3 + $0x8] sm:$0xff] %vm130_vm2, %v127_v21 }

// kernel: albert_encoder_forward.11
= control target key start
LH: loop header
LB: loop body
LE: loop exit
PB: predicated region body
PF: predicated region fallthrough
CT: control target
= control target key end

     0   :  { %vm39_vm0 = vcmask 130048   ;;  %v116_v0 = vmov 0.0   ;;  %vm117_vm1 = vmmov 0   ;;  %vm90_vm2 = vcmask 261120   ;;  %s162_s1 = inlined_call_operand.vmem [shape: bf16[32,16], index: 1, kind: input, shape index: {}]   ;;  %s163_s0 = inlined_call_operand.vmem [shape: f32[16,16], index: 0, kind: input, shape index: {}]   ;;  %s164_s2 = inlined_call_operand.vmem [shape: f32[1,32], index: 2, kind: input, shape index: {}]   ;;  %s165_s3 = inlined_call_operand.vmem [shape: f32[16,32], index: 3, kind: output, shape index: {}]  }
   0x1   :  { %104 = vmatprep.subr.bf16.mxu0 %v116_v0  ;;  %v114_v1 = vld [vmem:[%s162_s1] sm:$0xff]   ;;  %108 = vmatprep.mubr.msk.bf16.mxu0 %vm117_vm1, %v116_v0  ;;  %v115_v3 = vld [vmem:[%s162_s1 + $0x8] sm:$0xff]  }
   0x2   :  { %v44_v2 = vsel %vm39_vm0, %v114_v1, 0  ;;  %v47_v4 = vsel %vm39_vm0, %v115_v3, 0  ;;  %v15_v5 = vld [vmem:[%s163_s0] sm:$0xff]  ;;  %v16_v6 = vld [vmem:[%s163_s0 + $0x8] sm:$0xff] }
   0x3   :  { %105 = vmatpush3.bf16.xpose.msra.mxu0 %v44_v2  ;;  %v21_v7 = vpack.c.bf16 %v16_v6, %v15_v5  ;;  %v97_v8 = vld [vmem:[%s164_s2] ss:$0 sm:$0xff] }
   0x4   :  { %106 = vmatprep.subr.bf16.mxu0 %v116_v0 }
   0xb   :  { %107 = vmatpush3.bf16.xpose.msra.mxu0 %v47_v4 }
  0x12   :  { %109 = vmatmul.mubr.msk.bf16.vlgmr.msra.gmra.mrb[0].mxu0 %vm39_vm0, %v21_v7 }
  0xe5   :  { %v83_v9 = vpop.f32.mrb[0].mxu0 }
  0xe6   :  { %v84_v10 = vadd.f32 %v97_v8, %v83_v9  ;;  %v110_v11 = vpop.f32.mrb[1].mxu0 }
  0xe7   :  { %v86_v12 = vpop.f32.mrb[2].mxu0 }
  0xe8   :  { %91 = vst.msk [vmem:[%s165_s3] sm:$0xff] %vm90_vm2, %v84_v10  ;;  %v87_v13 = vadd.f32 %v97_v8, %v86_v12  ;;  %v111_v14 = vpop.f32.mrb[3].mxu0 }
  0xea   :  { %92 = vst.msk [vmem:[%s165_s3 + $0x8] sm:$0xff] %vm90_vm2, %v87_v13 }

// kernel: albert_encoder_forward.14
= control target key start
LH: loop header
LB: loop body
LE: loop exit
PB: predicated region body
PF: predicated region fallthrough
CT: control target
= control target key end

     0   :  { %vm48_vm0 = vcmask 261120   ;;  %v184_v0 = vmov 0.0   ;;  %vm185_vm1 = vmmov 0   ;;  %s263_s1 = inlined_call_operand.vmem [shape: bf16[32,32], index: 1, kind: input, shape index: {}]   ;;  %s264_s0 = inlined_call_operand.vmem [shape: f32[16,32], index: 0, kind: input, shape index: {}]   ;;  %s265_s2 = inlined_call_operand.vmem [shape: f32[1,32], index: 2, kind: input, shape index: {}]   ;;  %s266_s3 = inlined_call_operand.vmem [shape: f32[16,32], index: 3, kind: input, shape index: {}]   ;;  %s267_s4 = inlined_call_operand.vmem [shape: f32[1,32], index: 4, kind: input, shape index: {}]   ;;  %s268_s5 = inlined_call_operand.vmem [shape: f32[1,32], index: 5, kind: input, shape index: {}]   ;;  %s269_s6 = inlined_call_operand.vmem [shape: f32[16,32], index: 6, kind: output, shape index: {}]  }
   0x1   :  { %168 = vmatprep.subr.bf16.mxu0 %v184_v0  ;;  %v178_v1 = vld [vmem:[%s263_s1] sm:$0xff]   ;;  %172 = vmatprep.mubr.msk.bf16.mxu0 %vm185_vm1, %v184_v0  ;;  %v179_v3 = vld [vmem:[%s263_s1 + $0x8] sm:$0xff]  }
   0x2   :  { %v53_v2 = vsel %vm48_vm0, %v178_v1, 0  ;;  %v56_v4 = vsel %vm48_vm0, %v179_v3, 0  ;;  %v24_v5 = vld [vmem:[%s264_s0] sm:$0xff]  ;;  %v25_v6 = vld [vmem:[%s264_s0 + $0x8] sm:$0xff] }
   0x3   :  { %169 = vmatpush3.bf16.xpose.msra.mxu0 %v53_v2  ;;  %v30_v7 = vpack.c.bf16 %v25_v6, %v24_v5  ;;  %v159_v8 = vld [vmem:[%s265_s2] ss:$0 sm:$0xff]  ;;  %v100_v14 = vld [vmem:[%s266_s3 + $0x8] sm:$0xff] }
   0x4   :  { %170 = vmatprep.subr.bf16.mxu0 %v184_v0  ;;  %v99_v10 = vld [vmem:[%s266_s3] sm:$0xff] }
   0x5   :  { %v163_v43 = vld [vmem:[%s267_s4] ss:$0 sm:$0xff] }
   0x6   :  { %v164_v45 = vld [vmem:[%s268_s5] ss:$0 sm:$0xff] }
   0xb   :  { %171 = vmatpush3.bf16.xpose.msra.mxu0 %v56_v4 }
  0x12   :  { %173 = vmatmul.mubr.msk.bf16.vlgmr.msra.gmra.mrb[0].mxu0 %vm48_vm0, %v30_v7 }
  0xe5   :  { %v92_v9 = vpop.f32.mrb[0].mxu0 }
  0xe6   :  { %v93_v11 = vadd.f32 %v159_v8, %v92_v9  ;;  %v174_v12 = vpop.f32.mrb[1].mxu0 }
  0xe7   :  { %v95_v13 = vpop.f32.mrb[2].mxu0 }
  0xe8   :  { %v101_v15 = vadd.f32 %v99_v10, %v93_v11  ;;  %v96_v16 = vadd.f32 %v159_v8, %v95_v13  ;;  %v175_v17 = vpop.f32.mrb[3].mxu0 }
  0xea   :  { %v102_v18 = vadd.f32 %v100_v14, %v96_v16  ;;  %v103_v19 = vsel %vm48_vm0, %v101_v15, 0.0  ;;  %v109_v20 = vmul.f32 %v101_v15, %v101_v15 }
  0xeb   :  { %104 = vadd.xlane.f32.xlu0 %v103_v19 }
  0xec   :  { %v111_v21 = vsel %vm48_vm0, %v109_v20, 0.0  ;;  %v110_v22 = vmul.f32 %v102_v18, %v102_v18  ;;  %v106_v23 = vsel %vm48_vm0, %v102_v18, 0.0 }
  0xed   :  { %112 = vadd.xlane.f32.xlu1 %v111_v21 }
  0xee   :  { %v114_v24 = vsel %vm48_vm0, %v110_v22, 0.0 }
  0xef   :  { %107 = vadd.xlane.f32.xlu0 %v106_v23 }
  0xf1   :  { %115 = vadd.xlane.f32.xlu1 %v114_v24 }
 0x178   :  { %v105_v25 = vpop.xlane.xlu0 %104 }
 0x179   :  { %v117_v26 = vmul.f32 0.03125, %v105_v25 }
 0x17a   :  { %v113_v27 = vpop.xlane.xlu1 %112 }
 0x17b   :  { %v121_v28 = vmul.f32 %v117_v26, %v117_v26  ;;  %v119_v29 = vmul.f32 0.03125, %v113_v27  ;;  %v127_v41 = vsub.f32 %v101_v15, %v117_v26 }
 0x17c   :  { %v108_v30 = vpop.xlane.xlu0 %107 }
 0x17d   :  { %v123_v31 = vsub.f32 %v119_v29, %v121_v28  ;;  %v118_v32 = vmul.f32 0.03125, %v108_v30 }
 0x17e   :  { %v116_v33 = vpop.xlane.xlu1 %115 }
 0x17f   :  { %v125_v34 = vmax.f32 %v123_v31, 0.0  ;;  %v122_v35 = vmul.f32 %v118_v32, %v118_v32  ;;  %v120_v36 = vmul.f32 0.03125, %v116_v33  ;;  %v128_v47 = vsub.f32 %v102_v18, %v118_v32 }
 0x181   :  { %v129_v37 = vadd.f32 1e-05, %v125_v34  ;;  %v124_v38 = vsub.f32 %v120_v36, %v122_v35 }
 0x183   :  { %180 = vrsqrt.f32 %v129_v37  ;;  %v126_v39 = vmax.f32 %v124_v38, 0.0 }
 0x185   :  { %v130_v40 = vadd.f32 1e-05, %v126_v39 }
 0x187   :  { %182 = vrsqrt.f32 %v130_v40 }
 0x18d   :  { %v181_v42 = vpop.eup %180 }
 0x18e   :  { %v133_v44 = vmul.f32 %v181_v42, %v127_v41 }
 0x190   :  { %v142_v46 = vmul.f32 %v163_v43, %v133_v44 }
 0x191   :  { %v183_v48 = vpop.eup %182 }
 0x192   :  { %v151_v49 = vadd.f32 %v164_v45, %v142_v46  ;;  %v134_v50 = vmul.f32 %v183_v48, %v128_v47 }
 0x194   :  { %153 = vst.msk [vmem:[%s269_s6] sm:$0xff] %vm48_vm0, %v151_v49  ;;  %v143_v51 = vmul.f32 %v163_v43, %v134_v50 }
 0x196   :  { %v152_v52 = vadd.f32 %v164_v45, %v143_v51 }
 0x198   :  { %154 = vst.msk [vmem:[%s269_s6 + $0x8] sm:$0xff] %vm48_vm0, %v152_v52 }

// kernel: albert_encoder_forward.13
= control target key start
LH: loop header
LB: loop body
LE: loop exit
PB: predicated region body
PF: predicated region fallthrough
CT: control target
= control target key end

     0   :  { %s866_s9 = smov 0   ;;  %s965_s0 = inlined_call_operand.vmem [shape: f32[2,8,96], index: 0, kind: input, shape index: {}]   ;;  %s966_s1 = inlined_call_operand.vmem [shape: f32[2,1,8], index: 1, kind: input, shape index: {}]   ;;  %s967_s2 = inlined_call_operand.vmem [shape: f32[2,8,32], index: 2, kind: output, shape index: {}]  }
   0x1 LB: > { %s705_s10 = sadd.s32 4294967295, %s833_s9   ;;  %p709_p0 = scmp.ge.s32.totalorder %s833_s9, 1  ;;  %s833_s9 = sphi %s866_s9, %s12_s9  }
   0x2   : > { %p119_p1 = scmp.lt.s32.totalorder %s833_s9, 3 }
   0x4   : > { %p120_p2 = pnand %p709_p0, %p119_p1 }
   0x5   : > { %p142_p3 = scmp.lt.s32.totalorder (!%p120_p2), %s705_s10, 1  ;;  %v835_v0 = vmov (!%p120_p2), 0.0   ;;  %vm836_vm0 = vmmov (!%p120_p2), 0   ;;  %s837_s15 = smov (!%p120_p2), 96   ;;  %vm168_vm1 = vcmask (!%p120_p2), 64512   ;;  %vm232_vm2 = vcmask (!%p120_p2), 1043456  }
   0x6   : > { %123 = sbr.rel (%p120_p2) target bundleno = 1599 (0x63f), region = 28  ;;  %739 = vmatprep.subr.bf16.mxu0 (!%p120_p2), %v835_v0  ;;  %741 = vmatprep.mubr.msk.bf16.mxu0 (!%p120_p2), %vm836_vm0, %v835_v0  ;;  %s838_s16 = smov (!%p120_p2), 64   ;;  %vm397_vm3 = vcmask (!%p120_p2), 130112   ;;  %vm519_vm4 = vcmask (!%p120_p2), 195712   ;;  %vm641_vm5 = vcmask (!%p120_p2), 261312  }
   0x7   : > { %745 = vmatprep.subr.bf16.mxu1 (!%p120_p2), %v835_v0  ;;  %747 = vmatprep.mubr.msk.bf16.mxu1 (!%p120_p2), %vm836_vm0, %v835_v0  ;;  %s839_s17 = smov (!%p120_p2), 88   ;;  %s840_s21 = smov (!%p120_p2), 72  }
   0x8   : > { %s841_s22 = smov (!%p120_p2), 120   ;;  %s842_s23 = smov (!%p120_p2), 80  }
   0x9   : > { %s843_s24 = smov (!%p120_p2), 112   ;;  %s844_s25 = smov (!%p120_p2), 104  }
   0xa   : > { %s845_s29 = smov (!%p120_p2), 56   ;;  %s846_s30 = smov (!%p120_p2), 48  }
   0xb   : > { %s847_s3 = smov (!%p120_p2), 40   ;;  %s848_s4 = smov (!%p120_p2), 8  }
   0xc   : > { %s849_s5 = smov (!%p120_p2), 16   ;;  %s850_s6 = smov (!%p120_p2), 24  }
   0xd   : > { %s969_s10 = smov (!%p142_p3, %s705_s10), 1 }
   0xe   : > { %s710_s11 = sshll.u32 %s969_s10, 3  ;;  %s148_s20 = scalar_lea.vmem %s966_s1, %s969_s10 }
   0xf   : > { %s145_s14 = scalar_lea.vmem %s965_s0, %s710_s11  ;;  %v902_v7 = vld [vmem:[%s148_s20] ss:$0 sm:$0xff]  ;;  %s931_s28 = scalar_lea.vmem %s967_s2, %s710_s11 }
  0x10   : > { %v155_v1 = vld [vmem:[%s145_s14] sm:$0xff] }
  0x11   : > { %v888_v2 = vpack.c.bf16 %v155_v1, %v155_v1  ;;  %v156_v4 = vmul.f32 0.35355338, %v155_v1 }
  0x13   : > { %166 = vrot.lane.b32.xlu0 %v888_v2, %s837_s15  ;;  %v157_v6 = vpack.c.bf16 %v156_v4, %v156_v4  ;;  %227 = vrot.lane.b32.xlu1 %v888_v2, %s838_s16 }
  0x17   : > { %285 = vrot.lane.b32.xlu1 %v888_v2, %s839_s17 }
  0x85   : > { %v167_v3 = vpop.permute.xlu0 %166  ;;  %v228_v14 = vpop.permute.xlu1 %227 }
  0x86   : > { %v173_v5 = vsel %vm168_vm1, %v167_v3, 0  ;;  %v234_v15 = vsel %vm232_vm2, %v228_v14, 0 }
  0x87   : > { %740 = vmatpush3.bf16.xpose.msra.mxu0 %v173_v5  ;;  %746 = vmatpush3.bf16.msra.mxu1 %v234_v15 }
  0x88   : > { %757 = vmatprep.subr.bf16.mxu0 %v835_v0  ;;  %751 = vmatprep.subr.bf16.mxu1 %v835_v0 }
  0x89   : > { %v286_v21 = vpop.permute.xlu1 %285 }
  0x8a   : > { %v291_v27 = vsel %vm168_vm1, %v286_v21, 0 }
  0x8e   : > { %742 = vmatmul.mubr.msk.bf16.vlgmr.msra.gmra.mrb[0].mxu0 %vm168_vm1, %v157_v6 }
  0x8f   : > { %759 = vmatprep.mubr.msk.bf16.mxu0 %vm836_vm0, %v835_v0 }
 0x161   : > { %v209_v8 = vpop.f32.mrb[0].mxu0 }
 0x162   : > { %v210_v9 = vadd.f32 %v902_v7, %v209_v8  ;;  %v743_v10 = vpop.f32.mrb[1].mxu0 }
 0x163   : > { %v212_v11 = vpop.f32.mrb[2].mxu0 }
 0x164   : > { %v744_v12 = vpop.f32.mrb[3].mxu0  ;;  %v215_v13 = vsel %vm168_vm1, %v210_v9, -inf }
 0x165   : > { %216 = vmax.xlane.f32.xlu0 %v215_v13 }
 0x17b   : > { %529 = vrot.lane.b32.xlu0 %v888_v2, %s840_s21 }
 0x1f2   : > { %v217_v16 = vpop.xlane.xlu0 %216 }
 0x1f3   : > { %v218_v17 = vsub.f32 %v210_v9, %v217_v16 }
 0x1f5   : > { %v219_v18 = vmul.f32 1.442695, %v218_v17 }
 0x1f6   : > { %v530_v30 = vpop.permute.xlu0 %529 }
 0x1f7   : > { %811 = vpow2.f32 %v219_v18  ;;  %v535_v32 = vsel %vm168_vm1, %v530_v30, 0 }
 0x201   : > { %v812_v19 = vpop.eup %811 }
 0x202   : > { %v221_v20 = vsel %vm168_vm1, %v812_v19, 0.0 }
 0x203   : > { %222 = vadd.xlane.f32.xlu1 %v221_v20 }
 0x214   : > { %282 = vrot.lane.b32.xlu1 %v157_v6, %s841_s22 }
 0x218   : > { %407 = vrot.lane.b32.xlu1 %v888_v2, %s842_s23 }
 0x21c   : > { %404 = vrot.lane.b32.xlu1 %v157_v6, %s843_s24 }
 0x220   : > { %526 = vrot.lane.b32.xlu1 %v157_v6, %s844_s25 }
 0x290   : > { %v223_v22 = vpop.xlane.xlu1 %222 }
 0x291   : > { %813 = vrcp.f32 %v223_v22 }
 0x294   : > { %v283_v25 = vpop.permute.xlu1 %282 }
 0x298   : > { %v408_v28 = vpop.permute.xlu1 %407 }
 0x299   : > { %v413_v29 = vsel %vm168_vm1, %v408_v28, 0 }
 0x29b   : > { %v814_v23 = vpop.eup %813 }
 0x29c   : > { %v225_v24 = vmul.f32 %v814_v23, %v812_v19  ;;  %v405_v31 = vpop.permute.xlu1 %404 }
 0x29e   : > { %v226_v26 = vpack.c.bf16 %v225_v24, %v225_v24 }
 0x2a0   : > { %748 = vmatmul.mubr.msk.bf16.vlgmr.msra.gmra.mrb[0].mxu1 %vm168_vm1, %v226_v26  ;;  %v527_v33 = vpop.permute.xlu1 %526 }
 0x2a1   : > { %752 = vmatpush3.bf16.xpose.msra.mxu1 %v291_v27  ;;  %753 = vmatprep.mubr.msk.bf16.mxu1 %vm836_vm0, %v835_v0 }
 0x2a2   : > { %763 = vmatprep.subr.bf16.mxu1 %v835_v0 }
 0x2a8   : > { %754 = vmatmul.mubr.msk.bf16.vlgmr.msra.gmra.mrb[4].mxu1 %vm168_vm1, %v283_v25 }
 0x2a9   : > { %764 = vmatpush3.bf16.xpose.msra.mxu1 %v413_v29  ;;  %765 = vmatprep.mubr.msk.bf16.mxu1 %vm836_vm0, %v835_v0 }
 0x2aa   : > { %775 = vmatprep.subr.bf16.mxu1 %v835_v0 }
 0x2b0   : > { %766 = vmatmul.mubr.msk.bf16.vlgmr.msra.gmra.mrb[8].mxu1 %vm168_vm1, %v405_v31 }
 0x2b1   : > { %776 = vmatpush3.bf16.xpose.msra.mxu1 %v535_v32  ;;  %777 = vmatprep.mubr.msk.bf16.mxu1 %vm836_vm0, %v835_v0 }
 0x2b8   : > { %778 = vmatmul.mubr.msk.bf16.vlgmr.msra.gmra.mrb[12].mxu1 %vm168_vm1, %v527_v33 }
 0x373   : > { %v270_v34 = vpop.f32.mrb[0].mxu1 }
 0x374   : > { %276 = vst.msk [vmem:[%s931_s28] sm:$0xff] %vm168_vm1, %v270_v34  ;;  %v749_v35 = vpop.f32.mrb[1].mxu1 }
 0x375   : > { %v273_v36 = vpop.f32.mrb[2].mxu1 }
 0x376   : > { %v750_v37 = vpop.f32.mrb[3].mxu1 }
 0x37b   : > { %v327_v38 = vpop.f32.mrb[4].mxu1 }
 0x37c   : > { %v328_v39 = vadd.f32 %v902_v7, %v327_v38  ;;  %v755_v40 = vpop.f32.mrb[5].mxu1 }
 0x37d   : > { %v330_v41 = vpop.f32.mrb[6].mxu1 }
 0x37e   : > { %v756_v42 = vpop.f32.mrb[7].mxu1  ;;  %v333_v43 = vsel %vm168_vm1, %v328_v39, -inf }
 0x37f   : > { %334 = vmax.xlane.f32.xlu1 %v333_v43 }
 0x383   : > { %v449_v44 = vpop.f32.mrb[8].mxu1 }
 0x384   : > { %v450_v45 = vadd.f32 %v902_v7, %v449_v44  ;;  %v767_v46 = vpop.f32.mrb[9].mxu1 }
 0x385   : > { %v452_v47 = vpop.f32.mrb[10].mxu1 }
 0x386   : > { %v455_v48 = vsel %vm168_vm1, %v450_v45, -inf  ;;  %v768_v49 = vpop.f32.mrb[11].mxu1 }
 0x387   : > { %456 = vmax.xlane.f32.xlu0 %v455_v48 }
 0x38b   : > { %v571_v50 = vpop.f32.mrb[12].mxu1 }
 0x38c   : > { %v572_v51 = vadd.f32 %v902_v7, %v571_v50  ;;  %v779_v52 = vpop.f32.mrb[13].mxu1 }
 0x38d   : > { %v574_v53 = vpop.f32.mrb[14].mxu1 }
 0x38e   : > { %v577_v54 = vsel %vm168_vm1, %v572_v51, -inf  ;;  %v780_v55 = vpop.f32.mrb[15].mxu1 }
 0x38f   : > { %578 = vmax.xlane.f32.xlu1 %v577_v54 }
 0x40c   : > { %v335_v56 = vpop.xlane.xlu1 %334 }
 0x40d   : > { %v336_v57 = vsub.f32 %v328_v39, %v335_v56 }
 0x40f   : > { %v337_v58 = vmul.f32 1.442695, %v336_v57 }
 0x411   : > { %815 = vpow2.f32 %v337_v58 }
 0x414   : > { %v457_v4 = vpop.xlane.xlu0 %456 }
 0x415   : > { %v458_v5 = vsub.f32 %v450_v45, %v457_v4 }
 0x417   : > { %v459_v6 = vmul.f32 1.442695, %v458_v5 }
 0x41b   : > { %v816_v59 = vpop.eup %815 }
 0x41c   : > { %v579_v60 = vpop.xlane.xlu1 %578  ;;  %v339_v61 = vsel %vm168_vm1, %v816_v59, 0.0 }
 0x41d   : > { %v580_v62 = vsub.f32 %v572_v51, %v579_v60  ;;  %340 = vadd.xlane.f32.xlu1 %v339_v61 }
 0x41f   : > { %v581_v63 = vmul.f32 1.442695, %v580_v62 }
 0x421   : > { %817 = vpow2.f32 %v581_v63 }
 0x422   : > { %819 = vpow2.f32 %v459_v6 }
 0x42b   : > { %v818_v1 = vpop.eup %817 }
 0x42c   : > { %v583_v3 = vsel %vm168_vm1, %v818_v1, 0.0  ;;  %v820_v7 = vpop.eup %819 }
 0x42d   : > { %584 = vadd.xlane.f32.xlu0 %v583_v3  ;;  %v461_v8 = vsel %vm168_vm1, %v820_v7, 0.0 }
 0x42e   : > { %345 = vrot.lane.b32.xlu1 %v888_v2, %s845_s29 }
 0x443   : > { %467 = vrot.lane.b32.xlu0 %v888_v2, %s846_s30 }
 0x452   : > { %462 = vadd.xlane.f32.xlu1 %v461_v8 }
 0x463   : > { %589 = vrot.lane.b32.xlu1 %v888_v2, %s847_s3 }
 0x4aa   : > { %v341_v9 = vpop.xlane.xlu1 %340 }
 0x4ab   : > { %821 = vrcp.f32 %v341_v9 }
 0x4ae   : > { %v346_v10 = vpop.permute.xlu1 %345 }
 0x4af   : > { %v351_v11 = vsel %vm232_vm2, %v346_v10, 0 }
 0x4b0   : > { %758 = vmatpush3.bf16.msra.mxu0 %v351_v11 }
 0x4b1   : > { %769 = vmatprep.subr.bf16.mxu0 %v835_v0 }
 0x4b5   : > { %v822_v12 = vpop.eup %821 }
 0x4b6   : > { %v343_v13 = vmul.f32 %v822_v12, %v816_v59 }
 0x4b8   : > { %v344_v14 = vpack.c.bf16 %v343_v13, %v343_v13 }
 0x4ba   : > { %760 = vmatmul.mubr.msk.bf16.vlgmr.msra.gmra.mrb[4].mxu0 %vm168_vm1, %v344_v14  ;;  %v585_v15 = vpop.xlane.xlu0 %584 }
 0x4bb   : > { %771 = vmatprep.mubr.msk.bf16.mxu0 %vm836_vm0, %v835_v0 }
 0x4be   : > { %v468_v16 = vpop.permute.xlu0 %467 }
 0x4bf   : > { %v473_v2 = vsel %vm232_vm2, %v468_v16, 0 }
 0x4c0   : > { %770 = vmatpush3.bf16.msra.mxu0 %v473_v2 }
 0x4c1   : > { %781 = vmatprep.subr.bf16.mxu0 %v835_v0 }
 0x4df   : > { %v463_v17 = vpop.xlane.xlu1 %462 }
 0x4e0   : > { %823 = vrcp.f32 %v463_v17 }
 0x4e1   : > { %825 = vrcp.f32 %v585_v15 }
 0x4e3   : > { %v590_v19 = vpop.permute.xlu1 %589 }
 0x4e4   : > { %v595_v21 = vsel %vm232_vm2, %v590_v19, 0 }
 0x4ea   : > { %v824_v18 = vpop.eup %823 }
 0x4eb   : > { %v465_v20 = vmul.f32 %v824_v18, %v820_v7  ;;  %v826_v23 = vpop.eup %825 }
 0x4ec   : > { %v587_v24 = vmul.f32 %v826_v23, %v818_v1 }
 0x4ed   : > { %v466_v22 = vpack.c.bf16 %v465_v20, %v465_v20 }
 0x4ee   : > { %v588_v25 = vpack.c.bf16 %v587_v24, %v587_v24 }
 0x4ef   : > { %772 = vmatmul.mubr.msk.bf16.vlgmr.msra.gmra.mrb[8].mxu0 %vm168_vm1, %v466_v22 }
 0x4f0   : > { %782 = vmatpush3.bf16.msra.mxu0 %v595_v21  ;;  %783 = vmatprep.mubr.msk.bf16.mxu0 %vm836_vm0, %v835_v0 }
 0x4f7   : > { %784 = vmatmul.mubr.msk.bf16.vlgmr.msra.gmra.mrb[12].mxu0 %vm168_vm1, %v588_v25 }
 0x58d   : > { %v387_v26 = vpop.f32.mrb[4].mxu0 }
 0x58e   : > { %394 = vrot.lane.b32.xlu1 %v387_v26, %s848_s4  ;;  %v761_v27 = vpop.f32.mrb[5].mxu0 }
 0x58f   : > { %v390_v28 = vpop.f32.mrb[6].mxu0 }
 0x590   : > { %v762_v29 = vpop.f32.mrb[7].mxu0 }
 0x5c2   : > { %v509_v30 = vpop.f32.mrb[8].mxu0 }
 0x5c3   : > { %516 = vrot.lane.b32.xlu0 %v509_v30, %s849_s5  ;;  %v773_v31 = vpop.f32.mrb[9].mxu0 }
 0x5c4   : > { %v512_v32 = vpop.f32.mrb[10].mxu0 }
 0x5c5   : > { %v774_v33 = vpop.f32.mrb[11].mxu0 }
 0x5ca   : > { %v631_v0 = vpop.f32.mrb[12].mxu0 }
 0x5cb   : > { %638 = vrot.lane.b32.xlu1 %v631_v0, %s850_s6  ;;  %v785_v34 = vpop.f32.mrb[13].mxu0 }
 0x5cc   : > { %v634_v35 = vpop.f32.mrb[14].mxu0 }
 0x5cd   : > { %v786_v36 = vpop.f32.mrb[15].mxu0 }
 0x600   : > { %v395_v37 = vpop.permute.xlu1 %394 }
 0x601   : > { %398 = vst.msk [vmem:[%s931_s28] sm:$0xff] %vm397_vm3, %v395_v37 }
 0x635   : > { %v517_v38 = vpop.permute.xlu0 %516 }
 0x636   : > { %520 = vst.msk [vmem:[%s931_s28] sm:$0xff] %vm519_vm4, %v517_v38 }
 0x63d   : > { %v639_v39 = vpop.permute.xlu1 %638 }
 0x63e   : > { %642 = vst.msk [vmem:[%s931_s28] sm:$0xff] %vm641_vm5, %v639_v39 }
 0x63f PF: > { %s12_s9 = sadd.s32 1, %s833_s9  }
 0x640   : > { %p9_p4 = scmp.ge.s32.totalorder %s12_s9, 4  }
 0x642   :  { %11 = sbr.rel (!%p9_p4) target bundleno = 1 (0x1), region = 61 }

// kernel: albert_encoder_forward.15
= control target key start
LH: loop header
LB: loop body
LE: loop exit
PB: predicated region body
PF: predicated region fallthrough
CT: control target
= control target key end

     0   :  { %vm53_vm0 = vcmask 261120   ;;  %v172_v0 = vmov 0.0   ;;  %vm173_vm1 = vmmov 0   ;;  %vm126_vm2 = vcmask 523264   ;;  %s226_s1 = inlined_call_operand.vmem [shape: bf16[64,32], index: 1, kind: input, shape index: {}]   ;;  %s227_s0 = inlined_call_operand.vmem [shape: f32[16,32], index: 0, kind: input, shape index: {}]   ;;  %s228_s2 = inlined_call_operand.vmem [shape: f32[1,64], index: 2, kind: input, shape index: {}]   ;;  %s229_s3 = inlined_call_operand.vmem [shape: f32[16,64], index: 3, kind: output, shape index: {}]  }
   0x1   :  { %146 = vmatprep.subr.bf16.mxu0 %v172_v0  ;;  %v160_v1 = vld [vmem:[%s226_s1] sm:$0xff]   ;;  %154 = vmatprep.mubr.msk.bf16.mxu0 %vm173_vm1, %v172_v0  ;;  %v161_v3 = vld [vmem:[%s226_s1 + $0x8] sm:$0xff]   ;;  %v162_v5 = vld [vmem:[%s226_s1 + $0x10] sm:$0xff]  }
   0x2   :  { %v58_v2 = vsel %vm53_vm0, %v160_v1, 0  ;;  %v61_v4 = vsel %vm53_vm0, %v161_v3, 0  ;;  %v64_v6 = vsel %vm53_vm0, %v162_v5, 0  ;;  %v163_v7 = vld [vmem:[%s226_s1 + $0x18] sm:$0xff]   ;;  %v15_v9 = vld [vmem:[%s227_s0] sm:$0xff]  ;;  %v16_v10 = vld [vmem:[%s227_s0 + $0x8] sm:$0xff] }
   0x3   :  { %147 = vmatpush3.bf16.xpose.msra.mxu0 %v58_v2  ;;  %v67_v8 = vsel %vm53_vm0, %v163_v7, 0  ;;  %v25_v11 = vpack.c.bf16 %v16_v10, %v15_v9  ;;  %v133_v12 = vld [vmem:[%s228_s2] ss:$0 sm:$0xff] }
   0x4   :  { %148 = vmatprep.subr.bf16.mxu0 %v172_v0 }
   0xb   :  { %149 = vmatpush3.bf16.xpose.msra.mxu0 %v61_v4 }
   0xc   :  { %150 = vmatprep.subr.bf16.mxu0 %v172_v0 }
  0x13   :  { %151 = vmatpush3.bf16.xpose.msra.mxu0 %v64_v6 }
  0x14   :  { %152 = vmatprep.subr.bf16.mxu0 %v172_v0 }
  0x1b   :  { %153 = vmatpush3.bf16.xpose.msra.mxu0 %v67_v8 }
  0x22   :  { %155 = vmatmul.mubr.msk.bf16.vlgmr.msra.gmra.mrb[0].mxu0 %vm53_vm0, %v25_v11 }
  0xf5   :  { %v103_v13 = vpop.f32.mrb[0].mxu0 }
  0xf6   :  { %v104_v14 = vadd.f32 %v133_v12, %v103_v13  ;;  %v156_v15 = vpop.f32.mrb[1].mxu0 }
  0xf7   :  { %v106_v16 = vpop.f32.mrb[2].mxu0 }
  0xf8   :  { %v139_v17 = vmul.f32 -1.702, %v104_v14  ;;  %v107_v18 = vadd.f32 %v133_v12, %v106_v16  ;;  %v157_v19 = vpop.f32.mrb[3].mxu0 }
  0xfa   :  { %v114_v20 = vmul.f32 1.442695, %v139_v17  ;;  %v140_v21 = vmul.f32 -1.702, %v107_v18 }
  0xfc   :  { %164 = vpow2.f32 %v114_v20  ;;  %v116_v22 = vmul.f32 1.442695, %v140_v21 }
  0xfe   :  { %166 = vpow2.f32 %v116_v22 }
 0x106   :  { %v165_v23 = vpop.eup %164 }
 0x107   :  { %v118_v24 = vadd.f32 1.0, %v165_v23 }
 0x108   :  { %v167_v25 = vpop.eup %166 }
 0x109   :  { %168 = vrcp.f32 %v118_v24  ;;  %v119_v26 = vadd.f32 1.0, %v167_v25 }
 0x10b   :  { %170 = vrcp.f32 %v119_v26 }
 0x113   :  { %v169_v27 = vpop.eup %168 }
 0x114   :  { %v124_v28 = vmul.f32 %v169_v27, %v104_v14 }
 0x115   :  { %v171_v29 = vpop.eup %170 }
 0x116   :  { %127 = vst.msk [vmem:[%s229_s3] sm:$0xff] %vm126_vm2, %v124_v28  ;;  %v125_v30 = vmul.f32 %v171_v29, %v107_v18 }
 0x118   :  { %128 = vst.msk [vmem:[%s229_s3 + $0x8] sm:$0xff] %vm126_vm2, %v125_v30 }

// kernel: albert_encoder_forward.16
= control target key start
LH: loop header
LB: loop body
LE: loop exit
PB: predicated region body
PF: predicated region fallthrough
CT: control target
= control target key end

     0   :  { %vm48_vm0 = vcmask 523264   ;;  %v185_v0 = vmov 0.0   ;;  %vm186_vm1 = vmmov 0   ;;  %vm103_vm2 = vcmask 261120   ;;  %s264_s1 = inlined_call_operand.vmem [shape: bf16[32,64], index: 1, kind: input, shape index: {}]   ;;  %s265_s0 = inlined_call_operand.vmem [shape: f32[16,64], index: 0, kind: input, shape index: {}]   ;;  %s266_s2 = inlined_call_operand.vmem [shape: f32[1,32], index: 2, kind: input, shape index: {}]   ;;  %s267_s3 = inlined_call_operand.vmem [shape: f32[16,32], index: 3, kind: input, shape index: {}]   ;;  %s268_s4 = inlined_call_operand.vmem [shape: f32[1,32], index: 4, kind: input, shape index: {}]   ;;  %s269_s5 = inlined_call_operand.vmem [shape: f32[1,32], index: 5, kind: input, shape index: {}]   ;;  %s270_s6 = inlined_call_operand.vmem [shape: f32[16,32], index: 6, kind: output, shape index: {}]  }
   0x1   :  { %169 = vmatprep.subr.bf16.mxu0 %v185_v0  ;;  %v179_v1 = vld [vmem:[%s264_s1] sm:$0xff]   ;;  %173 = vmatprep.mubr.msk.bf16.mxu0 %vm186_vm1, %v185_v0  ;;  %v180_v3 = vld [vmem:[%s264_s1 + $0x8] sm:$0xff]  }
   0x2   :  { %v53_v2 = vsel %vm48_vm0, %v179_v1, 0  ;;  %v56_v4 = vsel %vm48_vm0, %v180_v3, 0  ;;  %v24_v5 = vld [vmem:[%s265_s0] sm:$0xff]  ;;  %v25_v6 = vld [vmem:[%s265_s0 + $0x8] sm:$0xff] }
   0x3   :  { %170 = vmatpush3.bf16.xpose.msra.mxu0 %v53_v2  ;;  %v30_v7 = vpack.c.bf16 %v25_v6, %v24_v5  ;;  %v160_v8 = vld [vmem:[%s266_s2] ss:$0 sm:$0xff]  ;;  %v100_v14 = vld [vmem:[%s267_s3 + $0x8] sm:$0xff] }
   0x4   :  { %171 = vmatprep.subr.bf16.mxu0 %v185_v0  ;;  %v99_v10 = vld [vmem:[%s267_s3] sm:$0xff] }
   0x5   :  { %v164_v43 = vld [vmem:[%s268_s4] ss:$0 sm:$0xff] }
   0x6   :  { %v165_v45 = vld [vmem:[%s269_s5] ss:$0 sm:$0xff] }
   0xb   :  { %172 = vmatpush3.bf16.xpose.msra.mxu0 %v56_v4 }
  0x12   :  { %174 = vmatmul.mubr.msk.bf16.vlgmr.msra.gmra.mrb[0].mxu0 %vm48_vm0, %v30_v7 }
  0xe5   :  { %v92_v9 = vpop.f32.mrb[0].mxu0 }
  0xe6   :  { %v93_v11 = vadd.f32 %v160_v8, %v92_v9  ;;  %v175_v12 = vpop.f32.mrb[1].mxu0 }
  0xe7   :  { %v95_v13 = vpop.f32.mrb[2].mxu0 }
  0xe8   :  { %v101_v15 = vadd.f32 %v99_v10, %v93_v11  ;;  %v96_v16 = vadd.f32 %v160_v8, %v95_v13  ;;  %v176_v17 = vpop.f32.mrb[3].mxu0 }
  0xea   :  { %v102_v18 = vadd.f32 %v100_v14, %v96_v16  ;;  %v104_v19 = vsel %vm103_vm2, %v101_v15, 0.0  ;;  %v110_v20 = vmul.f32 %v101_v15, %v101_v15 }
  0xeb   :  { %105 = vadd.xlane.f32.xlu0 %v104_v19 }
  0xec   :  { %v112_v21 = vsel %vm103_vm2, %v110_v20, 0.0  ;;  %v111_v22 = vmul.f32 %v102_v18, %v102_v18  ;;  %v107_v23 = vsel %vm103_vm2, %v102_v18, 0.0 }
  0xed   :  { %113 = vadd.xlane.f32.xlu1 %v112_v21 }
  0xee   :  { %v115_v24 = vsel %vm103_vm2, %v111_v22, 0.0 }
  0xef   :  { %108 = vadd.xlane.f32.xlu0 %v107_v23 }
  0xf1   :  { %116 = vadd.xlane.f32.xlu1 %v115_v24 }
 0x178   :  { %v106_v25 = vpop.xlane.xlu0 %105 }
 0x179   :  { %v118_v26 = vmul.f32 0.03125, %v106_v25 }
 0x17a   :  { %v114_v27 = vpop.xlane.xlu1 %113 }
 0x17b   :  { %v122_v28 = vmul.f32 %v118_v26, %v118_v26  ;;  %v120_v29 = vmul.f32 0.03125, %v114_v27  ;;  %v128_v41 = vsub.f32 %v101_v15, %v118_v26 }
 0x17c   :  { %v109_v30 = vpop.xlane.xlu0 %108 }
 0x17d   :  { %v124_v31 = vsub.f32 %v120_v29, %v122_v28  ;;  %v119_v32 = vmul.f32 0.03125, %v109_v30 }
 0x17e   :  { %v117_v33 = vpop.xlane.xlu1 %116 }
 0x17f   :  { %v126_v34 = vmax.f32 %v124_v31, 0.0  ;;  %v123_v35 = vmul.f32 %v119_v32, %v119_v32  ;;  %v121_v36 = vmul.f32 0.03125, %v117_v33  ;;  %v129_v47 = vsub.f32 %v102_v18, %v119_v32 }
 0x181   :  { %v130_v37 = vadd.f32 1e-05, %v126_v34  ;;  %v125_v38 = vsub.f32 %v121_v36, %v123_v35 }
 0x183   :  { %181 = vrsqrt.f32 %v130_v37  ;;  %v127_v39 = vmax.f32 %v125_v38, 0.0 }
 0x185   :  { %v131_v40 = vadd.f32 1e-05, %v127_v39 }
 0x187   :  { %183 = vrsqrt.f32 %v131_v40 }
 0x18d   :  { %v182_v42 = vpop.eup %181 }
 0x18e   :  { %v134_v44 = vmul.f32 %v182_v42, %v128_v41 }
 0x190   :  { %v143_v46 = vmul.f32 %v164_v43, %v134_v44 }
 0x191   :  { %v184_v48 = vpop.eup %183 }
 0x192   :  { %v152_v49 = vadd.f32 %v165_v45, %v143_v46  ;;  %v135_v50 = vmul.f32 %v184_v48, %v129_v47 }
 0x194   :  { %154 = vst.msk [vmem:[%s270_s6] sm:$0xff] %vm103_vm2, %v152_v49  ;;  %v144_v51 = vmul.f32 %v164_v43, %v135_v50 }
 0x196   :  { %v153_v52 = vadd.f32 %v165_v45, %v144_v51 }
 0x198   :  { %155 = vst.msk [vmem:[%s270_s6 + $0x8] sm:$0xff] %vm103_vm2, %v153_v52 }

// kernel: albert_encoder_forward.21
= control target key start
LH: loop header
LB: loop body
LE: loop exit
PB: predicated region body
PF: predicated region fallthrough
CT: control target
= control target key end

     0   :  { %v225_v1 = vmov 0.0   ;;  %vm49_vm0 = vcmask 523264   ;;  %vm226_vm1 = vmmov 0   ;;  %s310_s0 = inlined_call_operand.vmem [shape: f32[16,64], index: 0, kind: input, shape index: {}]   ;;  %s311_s1 = inlined_call_operand.vmem [shape: bf16[32,64], index: 1, kind: input, shape index: {}]   ;;  %s312_s2 = inlined_call_operand.vmem [shape: f32[1,32], index: 2, kind: input, shape index: {}]   ;;  %s313_s3 = inlined_call_operand.vmem [shape: f32[16,32], index: 3, kind: input, shape index: {}]   ;;  %s314_s4 = inlined_call_operand.vmem [shape: f32[1,32], index: 4, kind: input, shape index: {}]   ;;  %s315_s5 = inlined_call_operand.vmem [shape: f32[1,32], index: 5, kind: input, shape index: {}]   ;;  %s316_s6 = inlined_call_operand.hbm [shape: f32[16,32], index: 6, kind: output, shape index: {}]  }
   0x1   :  { %v195_v0 = vld [vmem:[%s311_s1] sm:$0xff]   ;;  %182 = vmatprep.subr.bf16.mxu0 %v225_v1  ;;  %186 = vmatprep.mubr.msk.bf16.mxu0 %vm226_vm1, %v225_v1 }
   0x2   :  { %v54_v2 = vsel %vm49_vm0, %v195_v0, 0 }
   0x3   :  { %183 = vmatpush3.bf16.xpose.msra.mxu0 %v54_v2 }
   0x4   :  { %11 = vsyncpa [#allocation3], 0  ;;  %184 = vmatprep.subr.bf16.mxu0 %v225_v1  ;;  %v196_v3 = vld [vmem:[%s311_s1 + $0x8] sm:$0xff]   ;;  %v25_v5 = vld [vmem:[%s310_s0] sm:$0xff]  ;;  %vm104_vm2 = vcmask 261120   ;;  %s227_s11 = smov [#allocation2]  }
   0x5   :  { %v57_v4 = vsel %vm49_vm0, %v196_v3, 0  ;;  %v26_v6 = vld [vmem:[%s310_s0 + $0x8] sm:$0xff]  ;;  %v173_v8 = vld [vmem:[%s312_s2] ss:$0 sm:$0xff]  ;;  %s162_s12 = sshll.u32 %s227_s11, 4  ;;  %s163_s12 = int_to_ptr.vmem [resolvable:$true] %s162_s12 }
   0x6   :  { %v31_v7 = vpack.c.bf16 %v26_v6, %v25_v5  ;;  %v100_v10 = vld [vmem:[%s313_s3] sm:$0xff]  ;;  %v101_v14 = vld [vmem:[%s313_s3 + $0x8] sm:$0xff]  ;;  %p206_p1 = scmp.lt.s32.totalorder %s163_s12, %s163_s12 }
   0x7   :  { %v177_v43 = vld [vmem:[%s314_s4] ss:$0 sm:$0xff]  ;;  %s201_s4 = scalar_lea.vmem %s163_s12, 256 }
   0x8   :  { %v178_v45 = vld [vmem:[%s315_s5] ss:$0 sm:$0xff]  ;;  %p202_p0 = scmp.ne.s32.totalorder %s163_s12, %s201_s4  ;;  %p207_p2 = scmp.lt.s32.totalorder %s201_s4, %s201_s4 }
   0xa   :  { %p208_p3 = por %p207_p2, %p206_p1 }
   0xb   :  { %185 = vmatpush3.bf16.xpose.msra.mxu0 %v57_v4 }
   0xc   :  { %p209_p4 = pnand %p208_p3, %p202_p0 }
  0x12   :  { %187 = vmatmul.mubr.msk.bf16.vlgmr.msra.gmra.mrb[0].mxu0 %vm49_vm0, %v31_v7 }
  0xe5   :  { %v93_v9 = vpop.f32.mrb[0].mxu0 }
  0xe6   :  { %v94_v11 = vadd.f32 %v173_v8, %v93_v9  ;;  %v188_v12 = vpop.f32.mrb[1].mxu0 }
  0xe7   :  { %v96_v13 = vpop.f32.mrb[2].mxu0 }
  0xe8   :  { %v102_v15 = vadd.f32 %v100_v10, %v94_v11  ;;  %v97_v16 = vadd.f32 %v173_v8, %v96_v13  ;;  %v189_v17 = vpop.f32.mrb[3].mxu0 }
  0xea   :  { %v103_v18 = vadd.f32 %v101_v14, %v97_v16  ;;  %v105_v19 = vsel %vm104_vm2, %v102_v15, 0.0  ;;  %v111_v20 = vmul.f32 %v102_v15, %v102_v15 }
  0xeb   :  { %106 = vadd.xlane.f32.xlu0 %v105_v19 }
  0xec   :  { %v113_v21 = vsel %vm104_vm2, %v111_v20, 0.0  ;;  %v112_v22 = vmul.f32 %v103_v18, %v103_v18  ;;  %v108_v23 = vsel %vm104_vm2, %v103_v18, 0.0 }
  0xed   :  { %114 = vadd.xlane.f32.xlu1 %v113_v21 }
  0xee   :  { %v116_v24 = vsel %vm104_vm2, %v112_v22, 0.0 }
  0xef   :  { %109 = vadd.xlane.f32.xlu0 %v108_v23 }
  0xf1   :  { %117 = vadd.xlane.f32.xlu1 %v116_v24 }
 0x178   :  { %v107_v25 = vpop.xlane.xlu0 %106 }
 0x179   :  { %v119_v26 = vmul.f32 0.03125, %v107_v25 }
 0x17a   :  { %v115_v27 = vpop.xlane.xlu1 %114 }
 0x17b   :  { %v123_v28 = vmul.f32 %v119_v26, %v119_v26  ;;  %v121_v29 = vmul.f32 0.03125, %v115_v27  ;;  %v129_v41 = vsub.f32 %v102_v15, %v119_v26 }
 0x17c   :  { %v110_v30 = vpop.xlane.xlu0 %109 }
 0x17d   :  { %v125_v31 = vsub.f32 %v121_v29, %v123_v28  ;;  %v120_v32 = vmul.f32 0.03125, %v110_v30 }
 0x17e   :  { %v118_v33 = vpop.xlane.xlu1 %117 }
 0x17f   :  { %v127_v34 = vmax.f32 %v125_v31, 0.0  ;;  %v124_v35 = vmul.f32 %v120_v32, %v120_v32  ;;  %v122_v36 = vmul.f32 0.03125, %v118_v33  ;;  %v130_v46 = vsub.f32 %v103_v18, %v120_v32 }
 0x181   :  { %v131_v37 = vadd.f32 1e-05, %v127_v34  ;;  %v126_v38 = vsub.f32 %v122_v36, %v124_v35 }
 0x183   :  { %197 = vrsqrt.f32 %v131_v37  ;;  %v128_v39 = vmax.f32 %v126_v38, 0.0 }
 0x185   :  { %v132_v40 = vadd.f32 1e-05, %v128_v39 }
 0x187   :  { %199 = vrsqrt.f32 %v132_v40 }
 0x18d   :  { %v198_v42 = vpop.eup %197 }
 0x18e   :  { %v135_v44 = vmul.f32 %v198_v42, %v129_v41 }
 0x190   :  { %v144_v47 = vmul.f32 %v177_v43, %v135_v44 }
 0x191   :  { %v200_v48 = vpop.eup %199 }
 0x192   :  { %v136_v49 = vmul.f32 %v200_v48, %v130_v46  ;;  %v153_v50 = vadd.f32 %v178_v45, %v144_v47 }
 0x194   :  { %v145_v51 = vmul.f32 %v177_v43, %v136_v49  ;;  %155 = vst.msk [vmem:[#allocation2] sm:$0xff] %vm104_vm2, %v153_v50 }
 0x196   :  { %v154_v52 = vadd.f32 %v178_v45, %v145_v51 }
 0x198   :  { %156 = vst.msk [vmem:[#allocation2 + $0x8] sm:$0xff] %vm104_vm2, %v154_v52 }
 0x199   :  { %212 = shalt.err (!%p209_p4)
}
 0x19a   :  { %s213_s14 = scalar_lea.hbm %s316_s6, 256 }
 0x19b   :  { %p214_p5 = scmp.ne.s32.totalorder %s316_s6, %s213_s14  ;;  %p217_p6 = scmp.lt.u32.totalorder %s213_s14, %s316_s6 }
 0x19d   :  { %p219_p7 = pnand %p217_p6, %p214_p5 }
 0x19f   :  { %222 = shalt.err (!%p219_p7)
}
 0x1a0   :  { %s228_s19 = smov 128   ;;  %s229_s20 = smov 8  }
 0x1a1   :  { %168 = dma.vmem_to_hbm [thread:$0]  %s163_s12, 256, %s316_s6, [#allocation3], %s228_s19, %s228_s19, %s229_s20  }
 0x1a2   :  { %223 = dma.done.wait [#allocation3], 256  }
 0x1a3   :  { %224 = vsyncadd [#allocation3], 4294967040 }
 0x1a4   :  { %172 = vsyncpa [#allocation3], 1 }

</bundles_post_ra>
